<compile_context>
chip_gen: v7x
topology: tpu7x:2x2x1
jax: 0.10.0
libtpu: 0.0.40
codegen_flags: <defaults>
</compile_context>

<pallas_src>
import functools

import jax
import jax.numpy as jnp
from jax.experimental import pallas as pl
from jax.experimental.pallas import tpu as pltpu

INPUT_SIZE = 1080
HIDDEN_SIZE = 240
OUT_SIZE = 24

# Padded (lane / sublane friendly) sizes.
IN_P = 1152    # ceil(1080/128)*128
H_P = 256      # ceil(240/128)*128
O_P = 128      # ceil(24/128)*128
TK = 384       # K-tile of the input projection (IN_P / 3)


def rnn_kernel(x_ref, wih_ref, whh_ref, b_ref, wo_ref, bo_ref, out_ref,
               xproj_ref, *, seq_len, batch):
    """Grid axis 0 tiles the input-feature (K) dimension of the projection.

    Per grid step k:
      x_ref     : (Mp, TK)   rows = time*batch (batch NOT padded), K-chunk k
      wih_ref   : (TK, H_P)  K-chunk k of transposed / zero-padded w_ih
    Constant across k:
      whh_ref   : (H_P, H_P)
      b_ref     : (1, H_P)   b_ih + b_hh (zero padded)
      wo_ref    : (H_P, O_P)
      bo_ref    : (1, O_P)
      out_ref   : (Mp, O_P)
      xproj_ref : (Mp, H_P)  VMEM scratch: accumulates bias + x @ w_ih^T,
                  then is overwritten row-block by row-block with the hidden
                  states, and finally fed to the output projection.
    """
    k = pl.program_id(0)
    nk = pl.num_programs(0)

    @pl.when(k == 0)
    def _init():
        # Fold the combined bias into the accumulator once.
        xproj_ref[...] = jnp.broadcast_to(b_ref[...], xproj_ref.shape)

    # Partial input projection for this K chunk; next chunk's w_ih DMA
    # overlaps this matmul via BlockSpec double buffering.
    xproj_ref[...] += jnp.dot(x_ref[...], wih_ref[...],
                              preferred_element_type=jnp.float32)

    @pl.when(k == nk - 1)
    def _finish():
        # Serial recurrence. seq_len is small & static -> plain Python unroll
        # (all slice offsets are compile-time constants).
        # Do NOT hoist whh_ref[...] out of the loop: keeping a 64-vreg value
        # live across all steps forces spills on the only serial chain.
        h = None
        for t in range(seq_len):
            off = t * batch                      # static offset
            pre = xproj_ref[off:off + batch, :]  # bias + x_t @ w_ih^T
            if t > 0:
                pre = pre + jnp.dot(h, whh_ref[...],
                                    preferred_element_type=jnp.float32)
            h = jnp.maximum(pre, 0.0)            # nonlinearity='relu'
            # Alias: this slice was consumed above; store h_t in place.
            xproj_ref[off:off + batch, :] = h

        # Hoisted output projection: one matmul, one lane-dense slab store.
        out_ref[...] = (
            jnp.dot(xproj_ref[...], wo_ref[...],
                    preferred_element_type=jnp.float32)
            + bo_ref[...]
        )


def rnn_model_forward(x, w_ih, w_hh, b_ih, b_hh, w_out, b_out):
    """x: (T, B, 1080). Weights in PyTorch shapes:
       w_ih (H, IN), w_hh (H, H), b_ih (H,), b_hh (H,), w_out (O, H), b_out (O,)."""
    T, B, in_dim = x.shape
    assert in_dim == INPUT_SIZE
    assert IN_P % TK == 0
    f32 = jnp.float32

    M = T * B
    Mp = ((M + 7) // 8) * 8   # any row pad goes once at the end, not per step

    # Pre-transpose + zero-pad weights/biases once. Zero padding keeps the
    # padded hidden lanes exactly 0 through ReLU, so they never contaminate
    # real lanes.
    wih_t = jnp.zeros((IN_P, H_P), f32).at[:INPUT_SIZE, :HIDDEN_SIZE].set(
        jnp.asarray(w_ih, f32).T)
    whh_t = jnp.zeros((H_P, H_P), f32).at[:HIDDEN_SIZE, :HIDDEN_SIZE].set(
        jnp.asarray(w_hh, f32).T)
    b = jnp.zeros((1, H_P), f32).at[0, :HIDDEN_SIZE].set(
        jnp.asarray(b_ih, f32) + jnp.asarray(b_hh, f32))
    wo_t = jnp.zeros((H_P, O_P), f32).at[:HIDDEN_SIZE, :OUT_SIZE].set(
        jnp.asarray(w_out, f32).T)
    bo = jnp.zeros((1, O_P), f32).at[0, :OUT_SIZE].set(jnp.asarray(b_out, f32))

    # x: only the feature (lane) dim is padded 1080->1152; batch is not padded.
    x_flat = jnp.zeros((Mp, IN_P), f32).at[:M, :INPUT_SIZE].set(
        jnp.asarray(x, f32).reshape(M, INPUT_SIZE))

    # TODO(synk): for large T add a T-tiling path (xproj/out scale linearly
    # with T and would hit v7x's 64 MiB VMEM around T ~ 2k) and, on v7x, split
    # the projection M across the two TensorCores; not needed at T=8.
    # TODO(synk): bf16 weights (f32 accumulate) would halve w_ih HBM traffic;
    # kept f32 to match PyTorch f32 semantics / tolerance exactly.

    out_flat = pl.pallas_call(
        functools.partial(rnn_kernel, seq_len=T, batch=B),
        out_shape=jax.ShapeDtypeStruct((Mp, O_P), f32),
        grid_spec=pltpu.PrefetchScalarGridSpec(
            num_scalar_prefetch=0,
            grid=(IN_P // TK,),
            in_specs=[
                pl.BlockSpec((Mp, TK), lambda k: (0, k)),     # x, K-chunk k
                pl.BlockSpec((TK, H_P), lambda k: (k, 0)),    # w_ih, K-chunk k
                pl.BlockSpec((H_P, H_P), lambda k: (0, 0)),   # w_hh (constant)
                pl.BlockSpec((1, H_P), lambda k: (0, 0)),     # bias  (constant)
                pl.BlockSpec((H_P, O_P), lambda k: (0, 0)),   # w_out (constant)
                pl.BlockSpec((1, O_P), lambda k: (0, 0)),     # b_out (constant)
            ],
            out_specs=pl.BlockSpec((Mp, O_P), lambda k: (0, 0)),
            scratch_shapes=[
                pltpu.VMEM((Mp, H_P), f32),   # xproj / hidden-state buffer
            ],
        ),
        compiler_params=pltpu.CompilerParams(
            dimension_semantics=("arbitrary",),
        ),
    )(x_flat, wih_t, whh_t, b, wo_t, bo)

    # Un-pad: (Mp, O_P) -> (T, B, OUT_SIZE).
    return out_flat[:M].reshape(T, B, O_P)[..., :OUT_SIZE]


def reference_forward(x, w_ih, w_hh, b_ih, b_hh, w_out, b_out):
    """Pure-JAX reference matching PyTorch semantics."""
    T, B, _ = x.shape
    h = jnp.zeros((B, HIDDEN_SIZE), jnp.float32)
    ys = []
    for t in range(T):
        h = jax.nn.relu(x[t] @ w_ih.T + b_ih + h @ w_hh.T + b_hh)
        ys.append(h @ w_out.T + b_out)
    return jnp.stack(ys, axis=0)


if __name__ == "__main__":
    key = jax.random.PRNGKey(0)
    ks = jax.random.split(key, 7)

    T, B = 8, 2  # seq_len=8, batch=2

    # Deterministic PyTorch-style init: uniform(-1/sqrt(H), 1/sqrt(H)).
    bound = 1.0 / jnp.sqrt(jnp.float32(HIDDEN_SIZE))
    w_ih = jax.random.uniform(ks[0], (HIDDEN_SIZE, INPUT_SIZE), jnp.float32, -bound, bound)
    w_hh = jax.random.uniform(ks[1], (HIDDEN_SIZE, HIDDEN_SIZE), jnp.float32, -bound, bound)
    b_ih = jax.random.uniform(ks[2], (HIDDEN_SIZE,), jnp.float32, -bound, bound)
    b_hh = jax.random.uniform(ks[3], (HIDDEN_SIZE,), jnp.float32, -bound, bound)
    w_out = jax.random.uniform(ks[4], (OUT_SIZE, HIDDEN_SIZE), jnp.float32, -bound, bound)
    b_out = jax.random.uniform(ks[5], (OUT_SIZE,), jnp.float32, -bound, bound)

    x = jax.random.normal(ks[6], (T, B, INPUT_SIZE), jnp.float32)

    y = rnn_model_forward(x, w_ih, w_hh, b_ih, b_hh, w_out, b_out)
    y = jax.block_until_ready(y)

    y_ref = reference_forward(x, w_ih, w_hh, b_ih, b_hh, w_out, b_out)
    assert y.shape == (T, B, OUT_SIZE)
    assert jnp.allclose(y, y_ref, atol=2e-4, rtol=2e-4)

    print("KERNEL_OK")
</pallas_src>

<mosaic_0001>
module attributes {stable_mosaic.version = 11 : i64} {
  func.func @rnn_kernel(%arg0: i32, %arg1: memref<16x384xf32, #tpu.memory_space<vmem>>, %arg2: memref<384x256xf32, #tpu.memory_space<vmem>>, %arg3: memref<256x256xf32, #tpu.memory_space<vmem>>, %arg4: memref<1x256xf32, #tpu.memory_space<vmem>>, %arg5: memref<256x128xf32, #tpu.memory_space<vmem>>, %arg6: memref<1x128xf32, #tpu.memory_space<vmem>>, %arg7: memref<16x128xf32, #tpu.memory_space<vmem>>, %arg8: memref<16x256xf32, #tpu.memory_space<vmem>>) attributes {dimension_semantics = [#tpu.dimension_semantics<arbitrary>], iteration_bounds = array<i64: 3>, scalar_prefetch = 0 : i64, scratch_operands = 1 : i64, tpu.core_type = #tpu.core_type<tc>, window_params = [{transform_indices = @transform_0, window_bounds = array<i64: 16, 384>}, {transform_indices = @transform_1, window_bounds = array<i64: 384, 256>}, {pipeline_mode = #tpu.pipeline_mode<synchronous>, transform_indices = @transform_2, window_bounds = array<i64: 256, 256>}, {pipeline_mode = #tpu.pipeline_mode<synchronous>, transform_indices = @transform_3, window_bounds = array<i64: 1, 256>}, {pipeline_mode = #tpu.pipeline_mode<synchronous>, transform_indices = @transform_4, window_bounds = array<i64: 256, 128>}, {pipeline_mode = #tpu.pipeline_mode<synchronous>, transform_indices = @transform_5, window_bounds = array<i64: 1, 128>}, {pipeline_mode = #tpu.pipeline_mode<synchronous>, transform_indices = @transform_6, window_bounds = array<i64: 16, 128>}]} {
    %c0_i32 = arith.constant 0 : i32
    %0 = arith.cmpi eq, %arg0, %c0_i32 : i32
    %1 = arith.extui %0 : i1 to i32
    %c0_i32_0 = arith.constant 0 : i32
    %2 = arith.cmpi ne, %1, %c0_i32_0 : i32
    scf.if %2 {
      %c0_9 = arith.constant 0 : index
      %c0_10 = arith.constant 0 : index
      %12 = vector.load %arg4[%c0_9, %c0_10] : memref<1x256xf32, #tpu.memory_space<vmem>>, vector<1x256xf32>
      %13 = vector.shape_cast %12 : vector<1x256xf32> to vector<1x256xf32>
      %14 = vector.broadcast %13 : vector<1x256xf32> to vector<16x256xf32>
      %c0_11 = arith.constant 0 : index
      %c0_12 = arith.constant 0 : index
      %15 = vector.load %arg8[%c0_11, %c0_12] : memref<16x256xf32, #tpu.memory_space<vmem>>, vector<16x256xf32>
      tpu.vector_store %arg8[%c0_11, %c0_12], %14 {strides = array<i32>} : memref<16x256xf32, #tpu.memory_space<vmem>>, vector<16x256xf32>,
    } else {
    }
    %c0 = arith.constant 0 : index
    %c0_1 = arith.constant 0 : index
    %3 = vector.load %arg8[%c0, %c0_1] : memref<16x256xf32, #tpu.memory_space<vmem>>, vector<16x256xf32>
    %c0_2 = arith.constant 0 : index
    %c0_3 = arith.constant 0 : index
    %4 = vector.load %arg1[%c0_2, %c0_3] : memref<16x384xf32, #tpu.memory_space<vmem>>, vector<16x384xf32>
    %c0_4 = arith.constant 0 : index
    %c0_5 = arith.constant 0 : index
    %5 = vector.load %arg2[%c0_4, %c0_5] : memref<384x256xf32, #tpu.memory_space<vmem>>, vector<384x256xf32>
    %cst = arith.constant dense<0.000000e+00> : vector<16x256xf32>
    %6 = tpu.matmul %4, %5, %cst {dimension_numbers = #tpu.dot_dimension_numbers<[1], [0], [0], [1], [0, 0, 1, 1], [], []>} : vector<16x384xf32>, vector<384x256xf32>, vector<16x256xf32> -> vector<16x256xf32>
    %7 = arith.addf %3, %6 : vector<16x256xf32>
    %c0_6 = arith.constant 0 : index
    %c0_7 = arith.constant 0 : index
    %8 = vector.load %arg8[%c0_6, %c0_7] : memref<16x256xf32, #tpu.memory_space<vmem>>, vector<16x256xf32>
    tpu.vector_store %arg8[%c0_6, %c0_7], %7 {strides = array<i32>} : memref<16x256xf32, #tpu.memory_space<vmem>>, vector<16x256xf32>,
    %c2_i32 = arith.constant 2 : i32
    %9 = arith.cmpi eq, %arg0, %c2_i32 : i32
    %10 = arith.extui %9 : i1 to i32
    %c0_i32_8 = arith.constant 0 : i32
    %11 = arith.cmpi ne, %10, %c0_i32_8 : i32
    scf.if %11 {
      %c0_9 = arith.constant 0 : index
      %c0_10 = arith.constant 0 : index
      %12 = vector.load %arg8[%c0_9, %c0_10] : memref<16x256xf32, #tpu.memory_space<vmem>>, vector<2x256xf32>
      %cst_11 = arith.constant 0.000000e+00 : f32
      %13 = vector.broadcast %cst_11 : f32 to vector<2x256xf32>
      %14 = arith.maximumf %12, %13 : vector<2x256xf32>
      %c0_12 = arith.constant 0 : index
      %c0_13 = arith.constant 0 : index
      %15 = vector.load %arg8[%c0_12, %c0_13] : memref<16x256xf32, #tpu.memory_space<vmem>>, vector<2x256xf32>
      tpu.vector_store %arg8[%c0_12, %c0_13], %14 {strides = array<i32>} : memref<16x256xf32, #tpu.memory_space<vmem>>, vector<2x256xf32>,
      %c2 = arith.constant 2 : index
      %c0_14 = arith.constant 0 : index
      %16 = vector.load %arg8[%c2, %c0_14] : memref<16x256xf32, #tpu.memory_space<vmem>>, vector<2x256xf32>
      %c0_15 = arith.constant 0 : index
      %c0_16 = arith.constant 0 : index
      %17 = vector.load %arg3[%c0_15, %c0_16] : memref<256x256xf32, #tpu.memory_space<vmem>>, vector<256x256xf32>
      %cst_17 = arith.constant dense<0.000000e+00> : vector<2x256xf32>
      %18 = tpu.matmul %14, %17, %cst_17 {dimension_numbers = #tpu.dot_dimension_numbers<[1], [0], [0], [1], [0, 0, 1, 1], [], []>} : vector<2x256xf32>, vector<256x256xf32>, vector<2x256xf32> -> vector<2x256xf32>
      %19 = arith.addf %16, %18 : vector<2x256xf32>
      %cst_18 = arith.constant 0.000000e+00 : f32
      %20 = vector.broadcast %cst_18 : f32 to vector<2x256xf32>
      %21 = arith.maximumf %19, %20 : vector<2x256xf32>
      %c2_19 = arith.constant 2 : index
      %c0_20 = arith.constant 0 : index
      %22 = vector.load %arg8[%c2_19, %c0_20] : memref<16x256xf32, #tpu.memory_space<vmem>>, vector<2x256xf32>
      tpu.vector_store %arg8[%c2_19, %c0_20], %21 {strides = array<i32>} : memref<16x256xf32, #tpu.memory_space<vmem>>, vector<2x256xf32>,
      %c4 = arith.constant 4 : index
      %c0_21 = arith.constant 0 : index
      %23 = vector.load %arg8[%c4, %c0_21] : memref<16x256xf32, #tpu.memory_space<vmem>>, vector<2x256xf32>
      %c0_22 = arith.constant 0 : index
      %c0_23 = arith.constant 0 : index
      %24 = vector.load %arg3[%c0_22, %c0_23] : memref<256x256xf32, #tpu.memory_space<vmem>>, vector<256x256xf32>
      %cst_24 = arith.constant dense<0.000000e+00> : vector<2x256xf32>
      %25 = tpu.matmul %21, %24, %cst_24 {dimension_numbers = #tpu.dot_dimension_numbers<[1], [0], [0], [1], [0, 0, 1, 1], [], []>} : vector<2x256xf32>, vector<256x256xf32>, vector<2x256xf32> -> vector<2x256xf32>
      %26 = arith.addf %23, %25 : vector<2x256xf32>
      %cst_25 = arith.constant 0.000000e+00 : f32
      %27 = vector.broadcast %cst_25 : f32 to vector<2x256xf32>
      %28 = arith.maximumf %26, %27 : vector<2x256xf32>
      %c4_26 = arith.constant 4 : index
      %c0_27 = arith.constant 0 : index
      %29 = vector.load %arg8[%c4_26, %c0_27] : memref<16x256xf32, #tpu.memory_space<vmem>>, vector<2x256xf32>
      tpu.vector_store %arg8[%c4_26, %c0_27], %28 {strides = array<i32>} : memref<16x256xf32, #tpu.memory_space<vmem>>, vector<2x256xf32>,
      %c6 = arith.constant 6 : index
      %c0_28 = arith.constant 0 : index
      %30 = vector.load %arg8[%c6, %c0_28] : memref<16x256xf32, #tpu.memory_space<vmem>>, vector<2x256xf32>
      %c0_29 = arith.constant 0 : index
      %c0_30 = arith.constant 0 : index
      %31 = vector.load %arg3[%c0_29, %c0_30] : memref<256x256xf32, #tpu.memory_space<vmem>>, vector<256x256xf32>
      %cst_31 = arith.constant dense<0.000000e+00> : vector<2x256xf32>
      %32 = tpu.matmul %28, %31, %cst_31 {dimension_numbers = #tpu.dot_dimension_numbers<[1], [0], [0], [1], [0, 0, 1, 1], [], []>} : vector<2x256xf32>, vector<256x256xf32>, vector<2x256xf32> -> vector<2x256xf32>
      %33 = arith.addf %30, %32 : vector<2x256xf32>
      %cst_32 = arith.constant 0.000000e+00 : f32
      %34 = vector.broadcast %cst_32 : f32 to vector<2x256xf32>
      %35 = arith.maximumf %33, %34 : vector<2x256xf32>
      %c6_33 = arith.constant 6 : index
      %c0_34 = arith.constant 0 : index
      %36 = vector.load %arg8[%c6_33, %c0_34] : memref<16x256xf32, #tpu.memory_space<vmem>>, vector<2x256xf32>
      tpu.vector_store %arg8[%c6_33, %c0_34], %35 {strides = array<i32>} : memref<16x256xf32, #tpu.memory_space<vmem>>, vector<2x256xf32>,
      %c8 = arith.constant 8 : index
      %c0_35 = arith.constant 0 : index
      %37 = vector.load %arg8[%c8, %c0_35] : memref<16x256xf32, #tpu.memory_space<vmem>>, vector<2x256xf32>
      %c0_36 = arith.constant 0 : index
      %c0_37 = arith.constant 0 : index
      %38 = vector.load %arg3[%c0_36, %c0_37] : memref<256x256xf32, #tpu.memory_space<vmem>>, vector<256x256xf32>
      %cst_38 = arith.constant dense<0.000000e+00> : vector<2x256xf32>
      %39 = tpu.matmul %35, %38, %cst_38 {dimension_numbers = #tpu.dot_dimension_numbers<[1], [0], [0], [1], [0, 0, 1, 1], [], []>} : vector<2x256xf32>, vector<256x256xf32>, vector<2x256xf32> -> vector<2x256xf32>
      %40 = arith.addf %37, %39 : vector<2x256xf32>
      %cst_39 = arith.constant 0.000000e+00 : f32
      %41 = vector.broadcast %cst_39 : f32 to vector<2x256xf32>
      %42 = arith.maximumf %40, %41 : vector<2x256xf32>
      %c8_40 = arith.constant 8 : index
      %c0_41 = arith.constant 0 : index
      %43 = vector.load %arg8[%c8_40, %c0_41] : memref<16x256xf32, #tpu.memory_space<vmem>>, vector<2x256xf32>
      tpu.vector_store %arg8[%c8_40, %c0_41], %42 {strides = array<i32>} : memref<16x256xf32, #tpu.memory_space<vmem>>, vector<2x256xf32>,
      %c10 = arith.constant 10 : index
      %c0_42 = arith.constant 0 : index
      %44 = vector.load %arg8[%c10, %c0_42] : memref<16x256xf32, #tpu.memory_space<vmem>>, vector<2x256xf32>
      %c0_43 = arith.constant 0 : index
      %c0_44 = arith.constant 0 : index
      %45 = vector.load %arg3[%c0_43, %c0_44] : memref<256x256xf32, #tpu.memory_space<vmem>>, vector<256x256xf32>
      %cst_45 = arith.constant dense<0.000000e+00> : vector<2x256xf32>
      %46 = tpu.matmul %42, %45, %cst_45 {dimension_numbers = #tpu.dot_dimension_numbers<[1], [0], [0], [1], [0, 0, 1, 1], [], []>} : vector<2x256xf32>, vector<256x256xf32>, vector<2x256xf32> -> vector<2x256xf32>
      %47 = arith.addf %44, %46 : vector<2x256xf32>
      %cst_46 = arith.constant 0.000000e+00 : f32
      %48 = vector.broadcast %cst_46 : f32 to vector<2x256xf32>
      %49 = arith.maximumf %47, %48 : vector<2x256xf32>
      %c10_47 = arith.constant 10 : index
      %c0_48 = arith.constant 0 : index
      %50 = vector.load %arg8[%c10_47, %c0_48] : memref<16x256xf32, #tpu.memory_space<vmem>>, vector<2x256xf32>
      tpu.vector_store %arg8[%c10_47, %c0_48], %49 {strides = array<i32>} : memref<16x256xf32, #tpu.memory_space<vmem>>, vector<2x256xf32>,
      %c12 = arith.constant 12 : index
      %c0_49 = arith.constant 0 : index
      %51 = vector.load %arg8[%c12, %c0_49] : memref<16x256xf32, #tpu.memory_space<vmem>>, vector<2x256xf32>
      %c0_50 = arith.constant 0 : index
      %c0_51 = arith.constant 0 : index
      %52 = vector.load %arg3[%c0_50, %c0_51] : memref<256x256xf32, #tpu.memory_space<vmem>>, vector<256x256xf32>
      %cst_52 = arith.constant dense<0.000000e+00> : vector<2x256xf32>
      %53 = tpu.matmul %49, %52, %cst_52 {dimension_numbers = #tpu.dot_dimension_numbers<[1], [0], [0], [1], [0, 0, 1, 1], [], []>} : vector<2x256xf32>, vector<256x256xf32>, vector<2x256xf32> -> vector<2x256xf32>
      %54 = arith.addf %51, %53 : vector<2x256xf32>
      %cst_53 = arith.constant 0.000000e+00 : f32
      %55 = vector.broadcast %cst_53 : f32 to vector<2x256xf32>
      %56 = arith.maximumf %54, %55 : vector<2x256xf32>
      %c12_54 = arith.constant 12 : index
      %c0_55 = arith.constant 0 : index
      %57 = vector.load %arg8[%c12_54, %c0_55] : memref<16x256xf32, #tpu.memory_space<vmem>>, vector<2x256xf32>
      tpu.vector_store %arg8[%c12_54, %c0_55], %56 {strides = array<i32>} : memref<16x256xf32, #tpu.memory_space<vmem>>, vector<2x256xf32>,
      %c14 = arith.constant 14 : index
      %c0_56 = arith.constant 0 : index
      %58 = vector.load %arg8[%c14, %c0_56] : memref<16x256xf32, #tpu.memory_space<vmem>>, vector<2x256xf32>
      %c0_57 = arith.constant 0 : index
      %c0_58 = arith.constant 0 : index
      %59 = vector.load %arg3[%c0_57, %c0_58] : memref<256x256xf32, #tpu.memory_space<vmem>>, vector<256x256xf32>
      %cst_59 = arith.constant dense<0.000000e+00> : vector<2x256xf32>
      %60 = tpu.matmul %56, %59, %cst_59 {dimension_numbers = #tpu.dot_dimension_numbers<[1], [0], [0], [1], [0, 0, 1, 1], [], []>} : vector<2x256xf32>, vector<256x256xf32>, vector<2x256xf32> -> vector<2x256xf32>
      %61 = arith.addf %58, %60 : vector<2x256xf32>
      %cst_60 = arith.constant 0.000000e+00 : f32
      %62 = vector.broadcast %cst_60 : f32 to vector<2x256xf32>
      %63 = arith.maximumf %61, %62 : vector<2x256xf32>
      %c14_61 = arith.constant 14 : index
      %c0_62 = arith.constant 0 : index
      %64 = vector.load %arg8[%c14_61, %c0_62] : memref<16x256xf32, #tpu.memory_space<vmem>>, vector<2x256xf32>
      tpu.vector_store %arg8[%c14_61, %c0_62], %63 {strides = array<i32>} : memref<16x256xf32, #tpu.memory_space<vmem>>, vector<2x256xf32>,
      %c0_63 = arith.constant 0 : index
      %c0_64 = arith.constant 0 : index
      %65 = vector.load %arg8[%c0_63, %c0_64] : memref<16x256xf32, #tpu.memory_space<vmem>>, vector<16x256xf32>
      %c0_65 = arith.constant 0 : index
      %c0_66 = arith.constant 0 : index
      %66 = vector.load %arg5[%c0_65, %c0_66] : memref<256x128xf32, #tpu.memory_space<vmem>>, vector<256x128xf32>
      %cst_67 = arith.constant dense<0.000000e+00> : vector<16x128xf32>
      %67 = tpu.matmul %65, %66, %cst_67 {dimension_numbers = #tpu.dot_dimension_numbers<[1], [0], [0], [1], [0, 0, 1, 1], [], []>} : vector<16x256xf32>, vector<256x128xf32>, vector<16x128xf32> -> vector<16x128xf32>
      %c0_68 = arith.constant 0 : index
      %c0_69 = arith.constant 0 : index
      %68 = vector.load %arg6[%c0_68, %c0_69] : memref<1x128xf32, #tpu.memory_space<vmem>>, vector<1x128xf32>
      %69 = vector.broadcast %68 : vector<1x128xf32> to vector<16x128xf32>
      %70 = arith.addf %67, %69 : vector<16x128xf32>
      %c0_70 = arith.constant 0 : index
      %c0_71 = arith.constant 0 : index
      %71 = vector.load %arg7[%c0_70, %c0_71] : memref<16x128xf32, #tpu.memory_space<vmem>>, vector<16x128xf32>
      tpu.vector_store %arg7[%c0_70, %c0_71], %70 {strides = array<i32>} : memref<16x128xf32, #tpu.memory_space<vmem>>, vector<16x128xf32>,
    } else {
    }
    return
  }
  func.func @transform_0(%arg0: i32) -> (i32, i32) {
    %c0_i32 = arith.constant 0 : i32
    %c0_i32_0 = arith.constant 0 : i32
    return %c0_i32, %arg0 : i32, i32
  }
  func.func @transform_1(%arg0: i32) -> (i32, i32) {
    %c0_i32 = arith.constant 0 : i32
    %c0_i32_0 = arith.constant 0 : i32
    return %arg0, %c0_i32 : i32, i32
  }
  func.func @transform_2(%arg0: i32) -> (i32, i32) {
    %c0_i32 = arith.constant 0 : i32
    %c0_i32_0 = arith.constant 0 : i32
    %c0_i32_1 = arith.constant 0 : i32
    return %c0_i32, %c0_i32_0 : i32, i32
  }
  func.func @transform_3(%arg0: i32) -> (i32, i32) {
    %c0_i32 = arith.constant 0 : i32
    %c0_i32_0 = arith.constant 0 : i32
    %c0_i32_1 = arith.constant 0 : i32
    return %c0_i32, %c0_i32_0 : i32, i32
  }
  func.func @transform_4(%arg0: i32) -> (i32, i32) {
    %c0_i32 = arith.constant 0 : i32
    %c0_i32_0 = arith.constant 0 : i32
    %c0_i32_1 = arith.constant 0 : i32
    return %c0_i32, %c0_i32_0 : i32, i32
  }
  func.func @transform_5(%arg0: i32) -> (i32, i32) {
    %c0_i32 = arith.constant 0 : i32
    %c0_i32_0 = arith.constant 0 : i32
    %c0_i32_1 = arith.constant 0 : i32
    return %c0_i32, %c0_i32_0 : i32, i32
  }
  func.func @transform_6(%arg0: i32) -> (i32, i32) {
    %c0_i32 = arith.constant 0 : i32
    %c0_i32_0 = arith.constant 0 : i32
    %c0_i32_1 = arith.constant 0 : i32
    return %c0_i32, %c0_i32_0 : i32, i32
  }
}

</mosaic_0001>

<bundles_post_ra>
// kernel: tpu_custom_call.1
= control target key start
LH: loop header
LB: loop body
LE: loop exit
PB: predicated region body
PF: predicated region fallthrough
CT: control target
= control target key end

     0   :  { %s3771_s0 = inlined_call_operand.hbm [shape: f32[16,1152], index: 0, kind: input, shape index: {}]   ;;  %s3772_s1 = inlined_call_operand.hbm [shape: f32[1152,256], index: 1, kind: input, shape index: {}]   ;;  %s3773_s2 = inlined_call_operand.hbm [shape: f32[256,256], index: 2, kind: input, shape index: {}]   ;;  %s3774_s3 = inlined_call_operand.hbm [shape: f32[1,256], index: 3, kind: input, shape index: {}]   ;;  %s3775_s4 = inlined_call_operand.hbm [shape: f32[256,128], index: 4, kind: input, shape index: {}]   ;;  %s3776_s5 = inlined_call_operand.hbm [shape: f32[1,128], index: 5, kind: input, shape index: {}]   ;;  %s3777_s6 = inlined_call_operand.hbm [shape: f32[16,128], index: 6, kind: output, shape index: {}]  }
   0x1   :  { %3783 = sst [smem:[#allocation21_spill]] %s3771_s0 }
   0x2   :  { %3784 = sst [smem:[#allocation22_spill]] %s3773_s2 }
   0x3   :  { %11 = vsyncpa [#allocation4], 0 }
   0x4   :  { %13 = vsyncpa [#allocation4 + $0x1], 0 }
   0x5   :  { %14 = vsyncpa [#allocation7], 0 }
   0x6   :  { %16 = vsyncpa [#allocation7 + $0x1], 0 }
   0x7   :  { %17 = vsyncpa [#allocation10], 0 }
   0x8   :  { %18 = vsyncpa [#allocation13], 0 }
   0x9   :  { %19 = vsyncpa [#allocation5], 0  ;;  %s3016_s21 = smov 0   ;;  %s3018_s22 = smov 0  }
   0xa   :  { %s3020_s23 = smov 0   ;;  %s3022_s24 = smov 0  }
   0xb LB: > { %s3035_s25 = sadd.s32 4294967295, %s2962_s24   ;;  %p45_p0 = scmp.ne.s32.totalorder %s2954_s22, %s2950_s21  ;;  %s2962_s24 = sphi %s3022_s24, %s3806_s24   ;;  %s2958_s23 = sphi %s3020_s23, %s3805_s23   ;;  %s2954_s22 = sphi %s3018_s22, %s3804_s22   ;;  %s2950_s21 = sphi %s3016_s21, %s3803_s21  }
   0xc   : > { %p3778_p1 = scmp.eq.s32.totalorder %s3035_s25, 0  ;;  %p1961_p2 = scmp.ge.s32.totalorder %s2962_s24, 1 }
   0xd   : > { %p187_p3 = scmp.lt.s32.totalorder %s2962_s24, 4  ;;  %s2964_s28 = smov [#allocation8]  }
   0xe   : > { %p3044_p5 = por %p3778_p1, %p45_p0  ;;  %s199_s29 = sshll.u32 %s2964_s28, 4  ;;  %s3052_s29 = int_to_ptr.vmem [resolvable:$true] %s199_s29 }
   0xf   : > { %p3048_p6 = pnand %p1961_p2, %p187_p3  ;;  %s2965_s7 = smov [#allocation9]  }
  0x10   : > { %s3785_s26 = scalar_select %p3044_p5, 1, 0 }
  0x11   : > { %s3786_s27 = scalar_select %p3048_p6, 1, 0 }
  0x12   : > { %p2632_p7 = pneg %p3048_p6  ;;  %s213_s8 = sshll.u32 %s2965_s7, 4  ;;  %s3062_s8 = int_to_ptr.vmem [resolvable:$true] %s213_s8 }
  0x13   : > { %s2966_s9 = smov [#allocation11]   ;;  %s3788_s2 = sld [smem:[#allocation22_spill]] }
  0x14   : > { %p3058_p8 = pnand %p2632_p7, %p3778_p1  ;;  %s3064_s10 = sshll.u32 %s2966_s9, 4  ;;  %s224_s10 = int_to_ptr.vmem [resolvable:$true] %s3064_s10 }
  0x16   : > { %p3074_p10 = pneg %p3058_p8 }
  0x19   : > { %s2710_s13 = scalar_lea.hbm %s3788_s2, 8192 }
  0x1a   : > { %p2711_p9 = scmp.ne.s32.totalorder %s3788_s2, %s2710_s13  ;;  %p2717_p13 = scmp.lt.u32.totalorder %s2710_s13, %s3788_s2 }
  0x1c   : > { %p2713_p11 = pnand %p3074_p10, %p2711_p9 }
  0x1e   : > { %p2714_p12 = pneg %p2713_p11 }
  0x20   : > { %p2719_p0 = pnand %p2717_p13, %p2714_p12 }
  0x22   : > { %2722 = shalt.err (!%p2719_p0)
}
  0x23   : > { %s2723_s19 = scalar_lea.vmem %s3052_s29, 8192  ;;  %p2731_p4 = scmp.lt.s32.totalorder %s3052_s29, %s3052_s29 }
  0x24   : > { %p2724_p2 = scmp.ne.s32.totalorder %s3052_s29, %s2723_s19  ;;  %p2732_p1 = scmp.lt.s32.totalorder %s2723_s19, %s2723_s19 }
  0x26   : > { %p2726_p3 = pnand %p2724_p2, %p3074_p10  ;;  %p2733_p9 = por %p2732_p1, %p2731_p4 }
  0x28   : > { %p2727_p7 = pneg %p2726_p3 }
  0x2a   : > { %p2734_p11 = pnand %p2733_p9, %p2727_p7 }
  0x2c   : > { %2737 = shalt.err (!%p2734_p11)
}
  0x2d   : > { %s3781_s20 = smov 256   ;;  %s3782_s21 = smov 16  }
  0x2e   : > { %2635 = dma.hbm_to_vmem [thread:$0]  (!%p3058_p8), %s3788_s2, 8192, %s3052_s29, [#allocation7], %s3781_s20, %s3781_s20, %s3782_s21  }
  0x2f   : > { %s2738_s12 = scalar_lea.hbm %s3774_s3, 32 }
  0x30   : > { %p2739_p1 = scmp.ne.s32.totalorder %s3774_s3, %s2738_s12  ;;  %p2745_p13 = scmp.lt.u32.totalorder %s2738_s12, %s3774_s3 }
  0x32   : > { %p2741_p4 = pnand %p2739_p1, %p3074_p10 }
  0x34   : > { %p2742_p12 = pneg %p2741_p4 }
  0x36   : > { %p2747_p0 = pnand %p2745_p13, %p2742_p12 }
  0x38   : > { %2750 = shalt.err (!%p2747_p0)
}
  0x39   : > { %s2751_s29 = scalar_lea.vmem %s3062_s8, 32  ;;  %p2759_p9 = scmp.lt.s32.totalorder %s3062_s8, %s3062_s8 }
  0x3a   : > { %p2752_p2 = scmp.ne.s32.totalorder %s3062_s8, %s2751_s29  ;;  %p2760_p11 = scmp.lt.s32.totalorder %s2751_s29, %s2751_s29 }
  0x3c   : > { %p2754_p3 = pnand %p2752_p2, %p3074_p10  ;;  %p2761_p1 = por %p2760_p11, %p2759_p9 }
  0x3e   : > { %p2755_p7 = pneg %p2754_p3 }
  0x40   : > { %p2762_p4 = pnand %p2761_p1, %p2755_p7 }
  0x42   : > { %2765 = shalt.err (!%p2762_p4)
}
  0x43   : > { %2638 = dma.hbm_to_vmem [thread:$0]  (!%p3058_p8), %s3774_s3, 32, %s3062_s8, [#allocation10]  }
  0x44   : > { %s2766_s9 = scalar_lea.hbm %s3775_s4, 4096 }
  0x45   : > { %p2767_p12 = scmp.ne.s32.totalorder %s3775_s4, %s2766_s9  ;;  %p2773_p2 = scmp.lt.u32.totalorder %s2766_s9, %s3775_s4 }
  0x47   : > { %p2769_p13 = pnand %p2767_p12, %p3074_p10 }
  0x49   : > { %p2770_p0 = pneg %p2769_p13 }
  0x4b   : > { %p2775_p3 = pnand %p2773_p2, %p2770_p0 }
  0x4d   : > { %2778 = shalt.err (!%p2775_p3)
}
  0x4e   : > { %s2779_s15 = scalar_lea.vmem %s224_s10, 4096  ;;  %p2787_p1 = scmp.lt.s32.totalorder %s224_s10, %s224_s10 }
  0x4f   : > { %p2780_p7 = scmp.ne.s32.totalorder %s224_s10, %s2779_s15  ;;  %p2788_p4 = scmp.lt.s32.totalorder %s2779_s15, %s2779_s15 }
  0x51   : > { %p2782_p9 = pnand %p2780_p7, %p3074_p10  ;;  %p2789_p5 = por %p2788_p4, %p2787_p1 }
  0x53   : > { %p2783_p11 = pneg %p2782_p9 }
  0x55   : > { %p2790_p6 = pnand %p2789_p5, %p2783_p11 }
  0x57   : > { %2793 = shalt.err (!%p2790_p6)
}
  0x58   : > { %s2969_s8 = smov 128   ;;  %s2970_s17 = smov 8  }
  0x59   : > { %2641 = dma.hbm_to_vmem [thread:$0]  (!%p3058_p8), %s3775_s4, 4096, %s224_s10, [#allocation10], %s2969_s8, %s2969_s8, %s2970_s17  }
  0x5a   : > { %s2971_s19 = smov [#allocation12]   ;;  %s2794_s11 = scalar_lea.hbm %s3776_s5, 16 }
  0x5b   : > { %s237_s28 = sshll.u32 %s2971_s19, 4  ;;  %p2795_p5 = scmp.ne.s32.totalorder %s3776_s5, %s2794_s11  ;;  %s238_s28 = int_to_ptr.vmem [resolvable:$true] %s237_s28 }
  0x5c   : > { %p2801_p13 = scmp.lt.u32.totalorder %s2794_s11, %s3776_s5 }
  0x5d   : > { %p2797_p6 = pnand %p2795_p5, %p3074_p10 }
  0x5f   : > { %p2798_p12 = pneg %p2797_p6 }
  0x61   : > { %p2803_p0 = pnand %p2801_p13, %p2798_p12 }
  0x63   : > { %2806 = shalt.err (!%p2803_p0)
}
  0x64   : > { %s2807_s10 = scalar_lea.vmem %s238_s28, 16  ;;  %s2814_s8 = scalar_lea.vmem %s238_s28, 32 }
  0x65   : > { %p2808_p2 = scmp.ne.s32.totalorder %s238_s28, %s2807_s10  ;;  %p2815_p9 = scmp.lt.s32.totalorder %s238_s28, %s238_s28 }
  0x66   : > { %p2816_p11 = scmp.lt.s32.totalorder %s2814_s8, %s2807_s10 }
  0x67   : > { %p2810_p3 = pnand %p2808_p2, %p3074_p10 }
  0x68   : > { %p2817_p1 = por %p2816_p11, %p2815_p9 }
  0x69   : > { %p2811_p7 = pneg %p2810_p3 }
  0x6b   : > { %p2818_p4 = pnand %p2817_p1, %p2811_p7 }
  0x6d   : > { %2821 = shalt.err (!%p2818_p4)
}
  0x6e   : > { %2644 = dma.hbm_to_vmem [thread:$0]  (!%p3058_p8), %s3776_s5, 16, %s238_s28, [#allocation13]  }
  0x6f   : > { %s3159_s16 = sadd.s32 1, %s2962_s24   ;;  %s32_s18 = sadd.s32 1, %s2958_s23 }
  0x70   : > { %s29_s30 = ssub.s32 %s2962_s24, %s3159_s16  ;;  %p39_p10 = scmp.ne.s32.totalorder %s2958_s23, %s2954_s22 }
  0x71   : > { %p30_p5 = scmp.eq.s32.totalorder %s29_s30, 0  ;;  %p40_p6 = scmp.eq.s32.totalorder %s2962_s24, 0 }
  0x72   : > { %p2656_p12 = scmp.lt.s32.totalorder %s2962_s24, 3  ;;  %s3169_s19 = sand.u32 1, %s2958_s23  }
  0x73   : > { %s3172_s7 = scalar_select %p30_p5, %s2958_s23, %s32_s18  }
  0x74   : > { %p41_p13 = por %p40_p6, %p39_p10  ;;  %s2604_s9 = smul.u32 48, %s3169_s19 }
  0x75   : > { %s1982_s11 = smul.u32 384, %s2962_s24  ;;  %s3791_s0 = sld [smem:[#allocation21_spill]] }
  0x76   : > { %p3176_p8 = pnand %p2656_p12, %p41_p13  ;;  %s252_s15 = scalar_lea.vmem [#allocation3], %s2604_s9 }
  0x77   : > { %s259_s10 = sshll.u32 %s252_s15, 4  ;;  %s269_s8 = sand.u32 1, %s2962_s24   ;;  %s3185_s10 = int_to_ptr.vmem [resolvable:$true] %s259_s10 }
  0x78   : > { %s249_s17 = scalar_lea.sflag [#allocation4], %s3169_s19  ;;  %p2824_p2 = pneg %p3176_p8 }
  0x7b   : > { %s3183_s14 = scalar_lea.hbm %s3791_s0, %s1982_s11  ;;  %s2827_s11 = scalar_lea.hbm %s3791_s0, 2304 }
  0x7c   : > { %s2822_s29 = scalar_lea.hbm %s3183_s14, 768  ;;  %p2828_p9 = scmp.lt.u32.totalorder %s3183_s14, %s3791_s0 }
  0x7d   : > { %p2823_p0 = scmp.ne.s32.totalorder %s3183_s14, %s2822_s29  ;;  %p2829_p11 = scmp.lt.u32.totalorder %s2827_s11, %s2822_s29 }
  0x7e   : > { %p2831_p4 = scmp.lt.u32.totalorder %s2822_s29, %s3183_s14 }
  0x7f   : > { %p2825_p3 = pnand %p2824_p2, %p2823_p0  ;;  %p2830_p1 = por %p2829_p11, %p2828_p9 }
  0x81   : > { %p2826_p7 = pneg %p2825_p3  ;;  %p2832_p10 = por %p2831_p4, %p2830_p1 }
  0x83   : > { %p2833_p5 = pnand %p2832_p10, %p2826_p7 }
  0x85   : > { %2836 = shalt.err (!%p2833_p5)
}
  0x86   : > { %s2837_s9 = scalar_lea.vmem %s3185_s10, 768  ;;  %s2972_s15 = smov [#allocation3]  }
  0x87   : > { %p2838_p6 = scmp.ne.s32.totalorder %s3185_s10, %s2837_s9  ;;  %s2842_s18 = sshll.u32 %s2972_s15, 4  ;;  %s2843_s18 = int_to_ptr.vmem [resolvable:$false] %s2842_s18 }
  0x88   : > { %s2844_s30 = scalar_lea.vmem %s2843_s18, 1536  ;;  %p2845_p0 = scmp.lt.s32.totalorder %s3185_s10, %s2843_s18 }
  0x89   : > { %p2840_p12 = pnand %p2838_p6, %p2824_p2  ;;  %p2846_p3 = scmp.lt.s32.totalorder %s2844_s30, %s2837_s9 }
  0x8b   : > { %p2841_p13 = pneg %p2840_p12  ;;  %p2847_p9 = por %p2846_p3, %p2845_p0 }
  0x8d   : > { %p2848_p11 = pnand %p2847_p9, %p2841_p13 }
  0x8f   : > { %2851 = shalt.err (!%p2848_p11)
}
  0x90   : > { %s2973_s29 = smov 1152   ;;  %s2974_s11 = smov 384  }
  0x91   : > { %s2975_s12 = smov 24   ;;  %s2605_s13 = smul.u32 768, %s3169_s19 }
  0x92   : > { %2648 = dma.hbm_to_vmem [thread:$0]  (!%p3176_p8), %s3183_s14, 768, %s3185_s10, %s249_s17, %s2973_s29, %s2974_s11, %s2975_s12  }
  0x93   : > { %s1985_s15 = smul.u32 12288, %s2962_s24  ;;  %s273_s20 = scalar_lea.vmem [#allocation6], %s2605_s13 }
  0x94   : > { %s281_s21 = sshll.u32 %s273_s20, 4  ;;  %s3227_s0 = scalar_lea.sflag [#allocation7], %s269_s8  ;;  %s3223_s21 = int_to_ptr.vmem [resolvable:$true] %s281_s21 }
  0x95   : > { %s3221_s30 = scalar_lea.hbm %s3772_s1, %s1985_s15  ;;  %s2857_s10 = scalar_lea.hbm %s3772_s1, 36864 }
  0x96   : > { %s2852_s2 = scalar_lea.hbm %s3221_s30, 12288  ;;  %p2858_p10 = scmp.lt.u32.totalorder %s3221_s30, %s3772_s1 }
  0x97   : > { %p2853_p7 = scmp.ne.s32.totalorder %s3221_s30, %s2852_s2  ;;  %p2859_p5 = scmp.lt.u32.totalorder %s2857_s10, %s2852_s2 }
  0x98   : > { %p2861_p12 = scmp.lt.u32.totalorder %s2852_s2, %s3221_s30 }
  0x99   : > { %p2855_p1 = pnand %p2853_p7, %p2824_p2  ;;  %p2860_p6 = por %p2859_p5, %p2858_p10 }
  0x9b   : > { %p2856_p4 = pneg %p2855_p1  ;;  %p2862_p13 = por %p2861_p12, %p2860_p6 }
  0x9d   : > { %p2863_p0 = pnand %p2862_p13, %p2856_p4 }
  0x9f   : > { %2866 = shalt.err (!%p2863_p0)
}
  0xa0   : > { %s2867_s24 = scalar_lea.vmem %s3223_s21, 12288  ;;  %s2976_s20 = smov [#allocation6]  }
  0xa1   : > { %p2868_p3 = scmp.ne.s32.totalorder %s3223_s21, %s2867_s24  ;;  %s2872_s8 = sshll.u32 %s2976_s20, 4  ;;  %s2873_s8 = int_to_ptr.vmem [resolvable:$false] %s2872_s8 }
  0xa2   : > { %s2874_s11 = scalar_lea.vmem %s2873_s8, 24576  ;;  %p2875_p7 = scmp.lt.s32.totalorder %s3223_s21, %s2873_s8 }
  0xa3   : > { %p2870_p9 = pnand %p2868_p3, %p2824_p2  ;;  %p2876_p1 = scmp.lt.s32.totalorder %s2874_s11, %s2867_s24 }
  0xa5   : > { %p2871_p11 = pneg %p2870_p9  ;;  %p2877_p10 = por %p2876_p1, %p2875_p7 }
  0xa7   : > { %p2878_p5 = pnand %p2877_p10, %p2871_p11 }
  0xa9   : > { %2881 = shalt.err (!%p2878_p5)
}
  0xaa   : > { %s3792_s2 = smov 16   ;;  %s3793_s12 = smov 256  }
  0xab   : > { %2651 = dma.hbm_to_vmem [thread:$0]  (!%p3176_p8), %s3221_s30, 12288, %s3223_s21, %s3227_s0, %s3793_s12, %s3793_s12, %s3792_s2  }
  0xac   : > { %p3794_p2 = scmp.ne.s32.totalorder %s3786_s27, 0 }
  0xad   : > { %s295_s13 = sand.u32 (!%p3794_p2), 1, %s2954_s22   ;;  %p3795_p4 = scmp.ne.s32.totalorder (!%p3794_p2), %s3785_s26, 0 }
  0xae   : > { %293 = sbr.rel (%p3794_p2) target bundleno = 2332 (0x91c), region = 44  ;;  %s296_s9 = scalar_lea.sflag (!%p3794_p2), [#allocation4], %s295_s13 }
  0xaf   : > { %s2606_s15 = smul.u32 (!%p3794_p2), 48, %s295_s13 }
  0xb1   : > { %s3259_s18 = scalar_lea.vmem (!%p3794_p2), [#allocation3], %s2606_s15 }
  0xb5   : > { %2925 = dma.done.wait (%p3795_p4), %s296_s9, 768  }
  0xb6   : > { %2927 = vsyncadd (%p3795_p4), %s296_s9, 4294966528  ;;  %s304_s28 = sand.u32 1, %s3035_s25   ;;  %s2607_s19 = smul.u32 768, %s295_s13 }
  0xb7   : > { %s305_s0 = scalar_lea.sflag [#allocation7], %s304_s28 }
  0xb8   : > { %s3266_s21 = scalar_lea.vmem [#allocation6], %s2607_s19 }
  0xb9   : > { %2929 = dma.done.wait (%p3795_p4), %s305_s0, 12288  }
  0xba   : > { %2931 = vsyncadd (%p3795_p4), %s305_s0, 4294955008  ;;  %p3796_p8 = scmp.eq.s32.totalorder %s3035_s25, 0 }
  0xbc   : > { %2933 = dma.done.wait (%p3796_p8), [#allocation7], 8192   ;;  %p3797_p6 = pmov %p3796_p8 }
  0xbe   : > { %2935 = vsyncadd (%p3797_p6), [#allocation7], 4294959104  ;;  %p3798_p12 = pmov %p3797_p6 }
  0xbf   : > { %p3799_p13 = pmov %p3797_p6 }
  0xc0   : > { %2937 = dma.done.wait (%p3798_p12), [#allocation10], 4128  }
  0xc1   : > { %2939 = vsyncadd (%p3799_p13), [#allocation10], 4294963168  ;;  %p3800_p0 = pmov %p3797_p6 }
  0xc3   : > { %2941 = dma.done.wait (%p3800_p0), [#allocation13], 16   ;;  %p3801_p3 = pmov %p3800_p0 }
  0xc4   : > { %p3802_p9 = scmp.ne.s32.totalorder %s3035_s25, 0 }
  0xc5   : > { %2943 = vsyncadd (%p3801_p3), [#allocation13], 4294967280  ;;  %v361_v0 = vlaneseq (!%p3802_p9)  ;;  %v359_v2 = vld [vmem:[#allocation9] sm:$0x3] (!%p3802_p9) }
  0xc6   : > { %358 = sbr.rel (%p3802_p9) target bundleno = 207 (0xcf), region = 72 }
  0xc7   : > { %v362_v1 = vshrl.u32 (!%p3802_p9), %v361_v0, 7 }
  0xc9   : > { %v363_v3 = vsub.s32 (!%p3802_p9), 0, %v362_v1  ;;  %v367_v4 = vsub.s32 (!%p3802_p9), 1, %v362_v1 }
  0xcb   : > { %v364_v5 = vrot.slane (!%p3802_p9), %v359_v2, %v363_v3  ;;  %v368_v6 = vrot.slane (!%p3802_p9), %v359_v2, %v367_v4 }
  0xcd   : > { %371 = vst [vmem:[#allocation2] sm:$0xff] %v364_v5  ;;  %373 = vst [vmem:[#allocation2 + $0x10] sm:$0xff] %v364_v5 }
  0xce   : > { %372 = vst [vmem:[#allocation2 + $0x8] sm:$0xff] %v368_v6  ;;  %374 = vst [vmem:[#allocation2 + $0x18] sm:$0xff] %v368_v6 }
  0xcf PF: > { %v386_v7 = vld [vmem:[%s3266_s21 + $0x8] sm:$0xff]  ;;  %v388_v8 = vld [vmem:[%s3266_s21 + $0x18] sm:$0xff]  ;;  %v385_v9 = vld [vmem:[%s3266_s21] sm:$0xff]  ;;  %v2977_v14 = vmov 0.0   ;;  %p1976_p11 = scmp.ne.s32.totalorder %s3035_s25, 2 }
  0xd0   : > { %v2024_v10 = vpack.c.bf16 %v388_v8, %v386_v7  ;;  %v387_v11 = vld [vmem:[%s3266_s21 + $0x10] sm:$0xff]  ;;  %v390_v12 = vld [vmem:[%s3266_s21 + $0x28] sm:$0xff]  ;;  %v392_v13 = vld [vmem:[%s3266_s21 + $0x38] sm:$0xff]  ;;  %622 = vmatprep.mubr.f32.mxu0 %v2977_v14 }
  0xd1   : > { %v2026_v15 = vpack.c.bf16 %v387_v11, %v385_v9  ;;  %v2028_v16 = vpack.c.bf16 %v392_v13, %v390_v12  ;;  %v389_v17 = vld [vmem:[%s3266_s21 + $0x20] sm:$0xff]  ;;  %v391_v18 = vld [vmem:[%s3266_s21 + $0x30] sm:$0xff]  ;;  %v394_v19 = vld [vmem:[%s3266_s21 + $0x48] sm:$0xff] }
  0xd2   : > { %2025 = vmatprep.subr.bf16.mxu1 %v2024_v10  ;;  %v396_v20 = vld [vmem:[%s3266_s21 + $0x58] sm:$0xff]  ;;  %v2030_v21 = vpack.c.bf16 %v391_v18, %v389_v17  ;;  %v393_v23 = vld [vmem:[%s3266_s21 + $0x40] sm:$0xff]  ;;  %v395_v24 = vld [vmem:[%s3266_s21 + $0x50] sm:$0xff] }
  0xd3   : > { %2027 = vmatpush1.bf16.msra.mxu1 %v2026_v15  ;;  %v2032_v22 = vpack.c.bf16 %v396_v20, %v394_v19  ;;  %v398_v25 = vld [vmem:[%s3266_s21 + $0x68] sm:$0xff]  ;;  %v400_v26 = vld [vmem:[%s3266_s21 + $0x78] sm:$0xff]  ;;  %v2034_v27 = vpack.c.bf16 %v395_v24, %v393_v23  ;;  %v397_v29 = vld [vmem:[%s3266_s21 + $0x60] sm:$0xff] }
  0xd4   : > { %2029 = vmatprep.subr.bf16.mxu1 %v2028_v16  ;;  %v2036_v28 = vpack.c.bf16 %v400_v26, %v398_v25  ;;  %v399_v30 = vld [vmem:[%s3266_s21 + $0x70] sm:$0xff]  ;;  %v402_v31 = vld [vmem:[%s3266_s21 + $0x88] sm:$0xff]  ;;  %v404_v32 = vld [vmem:[%s3266_s21 + $0x98] sm:$0xff] }
  0xd5   : > { %v450_v33 = vld [vmem:[%s3266_s21 + $0x208] sm:$0xff]  ;;  %v452_v34 = vld [vmem:[%s3266_s21 + $0x218] sm:$0xff]  ;;  %v2038_v35 = vpack.c.bf16 %v399_v30, %v397_v29  ;;  %v401_v36 = vld [vmem:[%s3266_s21 + $0x80] sm:$0xff]  ;;  %v2040_v40 = vpack.c.bf16 %v404_v32, %v402_v31 }
  0xd6   : > { %v2088_v37 = vpack.c.bf16 %v452_v34, %v450_v33  ;;  %v449_v38 = vld [vmem:[%s3266_s21 + $0x200] sm:$0xff]  ;;  %v451_v39 = vld [vmem:[%s3266_s21 + $0x210] sm:$0xff]  ;;  %v454_v43 = vld [vmem:[%s3266_s21 + $0x228] sm:$0xff] }
  0xd7   : > { %2031 = vmatpush1.bf16.msra.mxu1 %v2030_v21  ;;  %v403_v41 = vld [vmem:[%s3266_s21 + $0x90] sm:$0xff]  ;;  %v2090_v42 = vpack.c.bf16 %v451_v39, %v449_v38  ;;  %v456_v44 = vld [vmem:[%s3266_s21 + $0x238] sm:$0xff]  ;;  %v406_v45 = vld [vmem:[%s3266_s21 + $0xa8] sm:$0xff] }
  0xd8   : > { %2033 = vmatprep.subr.bf16.mxu1 %v2032_v22  ;;  %v408_v46 = vld [vmem:[%s3266_s21 + $0xb8] sm:$0xff]  ;;  %2089 = vmatprep.subr.bf16.mxu0 %v2088_v37  ;;  %v2092_v47 = vpack.c.bf16 %v456_v44, %v454_v43  ;;  %v453_v48 = vld [vmem:[%s3266_s21 + $0x220] sm:$0xff]  ;;  %v455_v49 = vld [vmem:[%s3266_s21 + $0x230] sm:$0xff]  ;;  %v2042_v50 = vpack.c.bf16 %v403_v41, %v401_v36 }
  0xd9   : > { %2091 = vmatpush1.bf16.msra.mxu0 %v2090_v42  ;;  %v405_v51 = vld [vmem:[%s3266_s21 + $0xa0] sm:$0xff]  ;;  %v2094_v52 = vpack.c.bf16 %v455_v49, %v453_v48  ;;  %v458_v53 = vld [vmem:[%s3266_s21 + $0x248] sm:$0xff]  ;;  %v460_v54 = vld [vmem:[%s3266_s21 + $0x258] sm:$0xff]  ;;  %v2044_v55 = vpack.c.bf16 %v408_v46, %v406_v45 }
  0xda   : > { %2093 = vmatprep.subr.bf16.mxu0 %v2092_v47  ;;  %v407_v56 = vld [vmem:[%s3266_s21 + $0xb0] sm:$0xff]  ;;  %v2096_v57 = vpack.c.bf16 %v460_v54, %v458_v53  ;;  %v457_v58 = vld [vmem:[%s3266_s21 + $0x240] sm:$0xff]  ;;  %v410_v60 = vld [vmem:[%s3266_s21 + $0xc8] sm:$0xff] }
  0xdb   : > { %2035 = vmatpush1.bf16.msra.mxu1 %v2034_v27  ;;  %v459_v59 = vld [vmem:[%s3266_s21 + $0x250] sm:$0xff]  ;;  %v412_v61 = vld [vmem:[%s3266_s21 + $0xd8] sm:$0xff]  ;;  %v462_v62 = vld [vmem:[%s3266_s21 + $0x268] sm:$0xff]  ;;  %v2046_v1 = vpack.c.bf16 %v407_v56, %v405_v51 }
  0xdc   : > { %2037 = vmatprep.subr.bf16.mxu1 %v2036_v28  ;;  %v2098_v63 = vpack.c.bf16 %v459_v59, %v457_v58  ;;  %v464_v0 = vld [vmem:[%s3266_s21 + $0x278] sm:$0xff]  ;;  %v409_v2 = vld [vmem:[%s3266_s21 + $0xc0] sm:$0xff]  ;;  %v463_v5 = vld [vmem:[%s3266_s21 + $0x270] sm:$0xff]  ;;  %v2048_v6 = vpack.c.bf16 %v412_v61, %v410_v60 }
  0xdd   : > { %2095 = vmatpush1.bf16.msra.mxu0 %v2094_v52  ;;  %v2100_v3 = vpack.c.bf16 %v464_v0, %v462_v62  ;;  %v461_v4 = vld [vmem:[%s3266_s21 + $0x260] sm:$0xff]  ;;  %v411_v7 = vld [vmem:[%s3266_s21 + $0xd0] sm:$0xff]  ;;  %v466_v8 = vld [vmem:[%s3266_s21 + $0x288] sm:$0xff] }
  0xde   : > { %2097 = vmatprep.subr.bf16.mxu0 %v2096_v57  ;;  %v468_v9 = vld [vmem:[%s3266_s21 + $0x298] sm:$0xff]  ;;  %v414_v10 = vld [vmem:[%s3266_s21 + $0xe8] sm:$0xff]  ;;  %v2102_v12 = vpack.c.bf16 %v463_v5, %v461_v4  ;;  %v2050_v13 = vpack.c.bf16 %v411_v7, %v409_v2  ;;  %v413_v15 = vld [vmem:[%s3266_s21 + $0xe0] sm:$0xff] }
  0xdf   : > { %2039 = vmatpush1.bf16.msra.mxu1 %v2038_v35  ;;  %v416_v11 = vld [vmem:[%s3266_s21 + $0xf8] sm:$0xff]  ;;  %v2104_v16 = vpack.c.bf16 %v468_v9, %v466_v8  ;;  %v465_v17 = vld [vmem:[%s3266_s21 + $0x280] sm:$0xff]  ;;  %v467_v18 = vld [vmem:[%s3266_s21 + $0x290] sm:$0xff] }
  0xe0   : > { %2041 = vmatprep.subr.bf16.mxu1 %v2040_v40  ;;  %v2052_v19 = vpack.c.bf16 %v416_v11, %v414_v10  ;;  %v415_v20 = vld [vmem:[%s3266_s21 + $0xf0] sm:$0xff]  ;;  %v470_v21 = vld [vmem:[%s3266_s21 + $0x2a8] sm:$0xff]  ;;  %v472_v22 = vld [vmem:[%s3266_s21 + $0x2b8] sm:$0xff]  ;;  %v2106_v25 = vpack.c.bf16 %v467_v18, %v465_v17 }
  0xe1   : > { %2099 = vmatpush1.bf16.msra.mxu0 %v2098_v63  ;;  %v418_v23 = vld [vmem:[%s3266_s21 + $0x108] sm:$0xff]  ;;  %v420_v24 = vld [vmem:[%s3266_s21 + $0x118] sm:$0xff]  ;;  %v2054_v26 = vpack.c.bf16 %v415_v20, %v413_v15  ;;  %v417_v27 = vld [vmem:[%s3266_s21 + $0x100] sm:$0xff]  ;;  %v2108_v28 = vpack.c.bf16 %v472_v22, %v470_v21 }
  0xe2   : > { %2101 = vmatprep.subr.bf16.mxu0 %v2100_v3  ;;  %v469_v29 = vld [vmem:[%s3266_s21 + $0x2a0] sm:$0xff]  ;;  %v471_v30 = vld [vmem:[%s3266_s21 + $0x2b0] sm:$0xff]  ;;  %v2056_v31 = vpack.c.bf16 %v420_v24, %v418_v23  ;;  %v474_v33 = vld [vmem:[%s3266_s21 + $0x2c8] sm:$0xff] }
  0xe3   : > { %2043 = vmatpush1.bf16.msra.mxu1 %v2042_v50  ;;  %v419_v32 = vld [vmem:[%s3266_s21 + $0x110] sm:$0xff]  ;;  %v476_v34 = vld [vmem:[%s3266_s21 + $0x2d8] sm:$0xff]  ;;  %v422_v35 = vld [vmem:[%s3266_s21 + $0x128] sm:$0xff]  ;;  %v2110_v38 = vpack.c.bf16 %v471_v30, %v469_v29 }
  0xe4   : > { %2045 = vmatprep.subr.bf16.mxu1 %v2044_v55  ;;  %v424_v36 = vld [vmem:[%s3266_s21 + $0x138] sm:$0xff]  ;;  %v421_v37 = vld [vmem:[%s3266_s21 + $0x120] sm:$0xff]  ;;  %v2058_v39 = vpack.c.bf16 %v419_v32, %v417_v27  ;;  %v2112_v40 = vpack.c.bf16 %v476_v34, %v474_v33  ;;  %v475_v42 = vld [vmem:[%s3266_s21 + $0x2d0] sm:$0xff] }
  0xe5   : > { %2103 = vmatpush1.bf16.msra.mxu0 %v2102_v12  ;;  %v473_v41 = vld [vmem:[%s3266_s21 + $0x2c0] sm:$0xff]  ;;  %v380_v43 = vld [vmem:[%s3259_s18 + $0x8] sm:$0xff]  ;;  %v2060_v44 = vpack.c.bf16 %v424_v36, %v422_v35  ;;  %v423_v45 = vld [vmem:[%s3266_s21 + $0x130] sm:$0xff] }
  0xe6   : > { %2105 = vmatprep.subr.bf16.mxu0 %v2104_v16  ;;  %v478_v46 = vld [vmem:[%s3266_s21 + $0x2e8] sm:$0xff]  ;;  %v480_v47 = vld [vmem:[%s3266_s21 + $0x2f8] sm:$0xff]  ;;  %545 = vmatprep.mubr.f32.mxu1 %v380_v43  ;;  %v2114_v50 = vpack.c.bf16 %v475_v42, %v473_v41  ;;  %v2062_v51 = vpack.c.bf16 %v423_v45, %v421_v37  ;;  %v477_v53 = vld [vmem:[%s3266_s21 + $0x2e0] sm:$0xff] }
  0xe7   : > { %2047 = vmatpush1.bf16.msra.mxu1 %v2046_v1  ;;  %v426_v48 = vld [vmem:[%s3266_s21 + $0x148] sm:$0xff]  ;;  %v428_v49 = vld [vmem:[%s3266_s21 + $0x158] sm:$0xff]  ;;  %v2116_v52 = vpack.c.bf16 %v480_v47, %v478_v46  ;;  %v479_v54 = vld [vmem:[%s3266_s21 + $0x2f0] sm:$0xff] }
  0xe8   : > { %2049 = vmatprep.subr.bf16.mxu1 %v2048_v6  ;;  %v2064_v55 = vpack.c.bf16 %v428_v49, %v426_v48  ;;  %v425_v56 = vld [vmem:[%s3266_s21 + $0x140] sm:$0xff]  ;;  %v427_v57 = vld [vmem:[%s3266_s21 + $0x150] sm:$0xff]  ;;  %v430_v58 = vld [vmem:[%s3266_s21 + $0x168] sm:$0xff]  ;;  %v2118_v60 = vpack.c.bf16 %v479_v54, %v477_v53 }
  0xe9   : > { %2107 = vmatpush1.bf16.msra.mxu0 %v2106_v25  ;;  %v432_v59 = vld [vmem:[%s3266_s21 + $0x178] sm:$0xff]  ;;  %v2066_v61 = vpack.c.bf16 %v427_v57, %v425_v56  ;;  %v429_v63 = vld [vmem:[%s3266_s21 + $0x160] sm:$0xff]  ;;  %v431_v0 = vld [vmem:[%s3266_s21 + $0x170] sm:$0xff] }
  0xea   : > { %2109 = vmatprep.subr.bf16.mxu0 %v2108_v28  ;;  %v2068_v62 = vpack.c.bf16 %v432_v59, %v430_v58  ;;  %v434_v1 = vld [vmem:[%s3266_s21 + $0x188] sm:$0xff]  ;;  %v436_v2 = vld [vmem:[%s3266_s21 + $0x198] sm:$0xff]  ;;  %v381_v3 = vld [vmem:[%s3259_s18 + $0x10] sm:$0xff]  ;;  %v2070_v4 = vpack.c.bf16 %v431_v0, %v429_v63 }
  0xeb   : > { %2051 = vmatpush1.bf16.msra.mxu1 %v2050_v13  ;;  %v2072_v5 = vpack.c.bf16 %v436_v2, %v434_v1  ;;  %v433_v6 = vld [vmem:[%s3266_s21 + $0x180] sm:$0xff]  ;;  %v435_v7 = vld [vmem:[%s3266_s21 + $0x190] sm:$0xff]  ;;  %v438_v8 = vld [vmem:[%s3266_s21 + $0x1a8] sm:$0xff] }
  0xec   : > { %2053 = vmatprep.subr.bf16.mxu1 %v2052_v19  ;;  %v440_v9 = vld [vmem:[%s3266_s21 + $0x1b8] sm:$0xff]  ;;  %v2074_v11 = vpack.c.bf16 %v435_v7, %v433_v6  ;;  %v437_v13 = vld [vmem:[%s3266_s21 + $0x1a0] sm:$0xff]  ;;  %v439_v15 = vld [vmem:[%s3266_s21 + $0x1b0] sm:$0xff] }
  0xed   : > { %2111 = vmatpush1.bf16.msra.mxu0 %v2110_v38  ;;  %v384_v10 = vld [vmem:[%s3259_s18 + $0x28] sm:$0xff]  ;;  %v2076_v12 = vpack.c.bf16 %v440_v9, %v438_v8  ;;  %v2078_v18 = vpack.c.bf16 %v439_v15, %v437_v13  ;;  %v441_v19 = vld [vmem:[%s3266_s21 + $0x1c0] sm:$0xff]  ;;  %v443_v20 = vld [vmem:[%s3266_s21 + $0x1d0] sm:$0xff] }
  0xee   : > { %2113 = vmatprep.subr.bf16.mxu0 %v2112_v40  ;;  %v442_v16 = vld [vmem:[%s3266_s21 + $0x1c8] sm:$0xff]  ;;  %v444_v17 = vld [vmem:[%s3266_s21 + $0x1d8] sm:$0xff]  ;;  %v2082_v23 = vpack.c.bf16 %v443_v20, %v441_v19  ;;  %v445_v25 = vld [vmem:[%s3266_s21 + $0x1e0] sm:$0xff] }
  0xef   : > { %2055 = vmatpush1.bf16.msra.mxu1 %v2054_v26  ;;  %v446_v21 = vld [vmem:[%s3266_s21 + $0x1e8] sm:$0xff]  ;;  %v448_v22 = vld [vmem:[%s3266_s21 + $0x1f8] sm:$0xff]  ;;  %v447_v26 = vld [vmem:[%s3266_s21 + $0x1f0] sm:$0xff] }
  0xf0   : > { %2057 = vmatprep.subr.bf16.mxu1 %v2056_v31  ;;  %v2084_v24 = vpack.c.bf16 %v448_v22, %v446_v21  ;;  %v2086_v27 = vpack.c.bf16 %v447_v26, %v445_v25  ;;  %v379_v28 = vld [vmem:[%s3259_s18] sm:$0xff]  ;;  %v382_v30 = vld [vmem:[%s3259_s18 + $0x18] sm:$0xff] }
  0xf1   : > { %2115 = vmatpush1.bf16.msra.mxu0 %v2114_v50  ;;  %v383_v29 = vld [vmem:[%s3259_s18 + $0x20] sm:$0xff]  ;;  %v376_v38 = vld [vmem:[#allocation2 + $0x8] sm:$0xff]  ;;  %v378_v46 = vld [vmem:[#allocation2 + $0x18] sm:$0xff] }
  0xf2   : > { %2117 = vmatprep.subr.bf16.mxu0 %v2116_v52  ;;  %v375_v35 = vld [vmem:[#allocation2] sm:$0xff]  ;;  %v377_v43 = vld [vmem:[#allocation2 + $0x10] sm:$0xff]  ;;  %v658_v52 = vld [vmem:[#allocation8 + $0x18] sm:$0xff] (!%p1976_p11) }
  0xf3   : > { %2059 = vmatpush1.bf16.msra.mxu1 %v2058_v39  ;;  %v655_v53 = vld [vmem:[#allocation8] sm:$0xff] (!%p1976_p11)  ;;  %v660_v56 = vld [vmem:[#allocation8 + $0x28] sm:$0xff] (!%p1976_p11)  ;;  %v662_v57 = vld [vmem:[#allocation8 + $0x38] sm:$0xff] (!%p1976_p11) }
  0xf4   : > { %2061 = vmatprep.subr.bf16.mxu1 %v2060_v44  ;;  %v3395_v59 = vpack.c.bf16 (!%p1976_p11), %v662_v57, %v660_v56  ;;  %v666_v63 = vld [vmem:[#allocation8 + $0x58] sm:$0xff] (!%p1976_p11)  ;;  %v663_v2 = vld [vmem:[#allocation8 + $0x40] sm:$0xff] (!%p1976_p11)  ;;  %v669_v9 = vld [vmem:[#allocation8 + $0x70] sm:$0xff] (!%p1976_p11) }
  0xf5   : > { %2119 = vmatpush1.bf16.msra.mxu0 %v2118_v60  ;;  %v659_v60 = vld [vmem:[#allocation8 + $0x20] sm:$0xff] (!%p1976_p11)  ;;  %v677_v21 = vld [vmem:[#allocation8 + $0xb0] sm:$0xff] (!%p1976_p11)  ;;  %v680_v22 = vld [vmem:[#allocation8 + $0xc8] sm:$0xff] (!%p1976_p11) }
  0xf6   : > { %v667_v8 = vld [vmem:[#allocation8 + $0x60] sm:$0xff] (!%p1976_p11)  ;;  %v697_v56 = vld [vmem:[#allocation8 + $0x150] sm:$0xff] (!%p1976_p11)  ;;  %v700_v57 = vld [vmem:[#allocation8 + $0x168] sm:$0xff] (!%p1976_p11) }
  0xf7   : > { %2063 = vmatpush1.bf16.msra.mxu1 %v2062_v51  ;;  %v656_v51 = vld [vmem:[#allocation8 + $0x8] sm:$0xff] (!%p1976_p11)  ;;  %v671_v15 = vld [vmem:[#allocation8 + $0x80] sm:$0xff] (!%p1976_p11) }
  0xf8   : > { %2065 = vmatprep.subr.bf16.mxu1 %v2064_v55  ;;  %623 = vmatmul.mubr.f32.vlgmr.msra.gmra.mrb[0].mxu0 %v381_v3  ;;  %v3391_v54 = vpack.c.bf16 (!%p1976_p11), %v658_v52, %v656_v51  ;;  %v657_v55 = vld [vmem:[#allocation8 + $0x10] sm:$0xff] (!%p1976_p11)  ;;  %v675_v20 = vld [vmem:[#allocation8 + $0xa0] sm:$0xff] (!%p1976_p11)  ;;  %v698_v51 = vld [vmem:[#allocation8 + $0x158] sm:$0xff] (!%p1976_p11) }
  0xf9   : > { %628 = vmatprep.mubr.f32.mxu0 %v2977_v14  ;;  %v2080_v14 = vpack.c.bf16 %v444_v17, %v442_v16  ;;  %v3393_v58 = vpack.c.bf16 (!%p1976_p11), %v657_v55, %v655_v53  ;;  %v665_v3 = vld [vmem:[#allocation8 + $0x50] sm:$0xff] (!%p1976_p11)  ;;  %v676_v17 = vld [vmem:[#allocation8 + $0xa8] sm:$0xff] (!%p1976_p11)  ;;  %v679_v25 = vld [vmem:[#allocation8 + $0xc0] sm:$0xff] (!%p1976_p11) }
  0xfa   : > { %2121 = vmatprep.subr.bf16.mxu0 (!%p1976_p11), %v3391_v54  ;;  %v3408_v6 = vpack.c.bf16 (!%p1976_p11), %v665_v3, %v663_v2  ;;  %v673_v16 = vld [vmem:[#allocation8 + $0x90] sm:$0xff] (!%p1976_p11)  ;;  %v695_v55 = vld [vmem:[#allocation8 + $0x140] sm:$0xff] (!%p1976_p11)  ;;  %v704_v3 = vld [vmem:[#allocation8 + $0x188] sm:$0xff] (!%p1976_p11) }
  0xfb   : > { %2067 = vmatpush1.bf16.msra.mxu1 %v2066_v61  ;;  %v661_v61 = vld [vmem:[#allocation8 + $0x30] sm:$0xff] (!%p1976_p11)  ;;  %2123 = vmatpush1.bf16.msra.mxu0 (!%p1976_p11), %v3393_v58 }
  0xfc   : > { %2069 = vmatprep.subr.bf16.mxu1 %v2068_v62  ;;  %629 = vmatmul.mubr.f32.gmra.mrb[2].mxu0 %v384_v10  ;;  %v664_v62 = vld [vmem:[#allocation8 + $0x48] sm:$0xff] (!%p1976_p11)  ;;  %v3400_v0 = vpack.c.bf16 (!%p1976_p11), %v661_v61, %v659_v60  ;;  %v702_v60 = vld [vmem:[#allocation8 + $0x178] sm:$0xff] (!%p1976_p11)  ;;  %v3477_v61 = vpack.c.bf16 (!%p1976_p11), %v697_v56, %v695_v55  ;;  %v701_v2 = vld [vmem:[#allocation8 + $0x170] sm:$0xff] (!%p1976_p11) }
  0xfd   : > { %2125 = vmatprep.subr.bf16.mxu0 (!%p1976_p11), %v3395_v59  ;;  %v3404_v1 = vpack.c.bf16 (!%p1976_p11), %v666_v63, %v664_v62  ;;  %v672_v10 = vld [vmem:[#allocation8 + $0x88] sm:$0xff] (!%p1976_p11)  ;;  %v3480_v62 = vpack.c.bf16 (!%p1976_p11), %v702_v60, %v700_v57  ;;  %v699_v63 = vld [vmem:[#allocation8 + $0x160] sm:$0xff] (!%p1976_p11)  ;;  %v1269_v60 = vld [vmem:[#allocation8 + $0x30] sm:$0xff] (!%p1976_p11) }
  0xfe   : > { %v1267_v57 = vld [vmem:[#allocation8 + $0x20] sm:$0xff] (!%p1976_p11) }
  0xff   : > { %2071 = vmatpush1.bf16.msra.mxu1 %v2070_v4  ;;  %v668_v4 = vld [vmem:[#allocation8 + $0x68] sm:$0xff] (!%p1976_p11)  ;;  %2127 = vmatpush1.bf16.msra.mxu0 (!%p1976_p11), %v3400_v0 }
 0x100   : > { %2073 = vmatprep.subr.bf16.mxu1 %v2072_v5  ;;  %v670_v5 = vld [vmem:[#allocation8 + $0x78] sm:$0xff] (!%p1976_p11)  ;;  %2129 = vmatprep.subr.bf16.mxu0 (!%p1976_p11), %v3404_v1 }
 0x101   : > { %v3412_v7 = vpack.c.bf16 (!%p1976_p11), %v670_v5, %v668_v4  ;;  %v706_v4 = vld [vmem:[#allocation8 + $0x198] sm:$0xff] (!%p1976_p11)  ;;  %v3485_v5 = vpack.c.bf16 (!%p1976_p11), %v701_v2, %v699_v63  ;;  %v3599_v63 = vpack.c.bf16 (!%p1976_p11), %v1269_v60, %v1267_v57  ;;  %v1309_v57 = vld [vmem:[#allocation8 + $0x170] sm:$0xff] (!%p1976_p11)  ;;  %v1312_v60 = vld [vmem:[#allocation8 + $0x188] sm:$0xff] (!%p1976_p11) }
 0x103   : > { %2075 = vmatpush1.bf16.msra.mxu1 %v2074_v11  ;;  %v674_v11 = vld [vmem:[#allocation8 + $0x98] sm:$0xff] (!%p1976_p11)  ;;  %2131 = vmatpush1.bf16.msra.mxu0 (!%p1976_p11), %v3408_v6 }
 0x104   : > { %2077 = vmatprep.subr.bf16.mxu1 %v2076_v12  ;;  %v3416_v12 = vpack.c.bf16 (!%p1976_p11), %v669_v9, %v667_v8  ;;  %2133 = vmatprep.subr.bf16.mxu0 (!%p1976_p11), %v3412_v7  ;;  %v3420_v13 = vpack.c.bf16 (!%p1976_p11), %v674_v11, %v672_v10  ;;  %v3488_v8 = vpack.c.bf16 (!%p1976_p11), %v706_v4, %v704_v3  ;;  %v703_v9 = vld [vmem:[#allocation8 + $0x180] sm:$0xff] (!%p1976_p11)  ;;  %v705_v10 = vld [vmem:[#allocation8 + $0x190] sm:$0xff] (!%p1976_p11)  ;;  %v708_v11 = vld [vmem:[#allocation8 + $0x1a8] sm:$0xff] (!%p1976_p11) }
 0x105   : > { %v1271_v3 = vld [vmem:[#allocation8 + $0x40] sm:$0xff] (!%p1976_p11)  ;;  %v1273_v4 = vld [vmem:[#allocation8 + $0x50] sm:$0xff] (!%p1976_p11) }
 0x107   : > { %2079 = vmatpush1.bf16.msra.mxu1 %v2078_v18  ;;  %v678_v18 = vld [vmem:[#allocation8 + $0xb8] sm:$0xff] (!%p1976_p11)  ;;  %2135 = vmatpush1.bf16.msra.mxu0 (!%p1976_p11), %v3416_v12 }
 0x108   : > { %2081 = vmatprep.subr.bf16.mxu1 %v2080_v14  ;;  %v3424_v14 = vpack.c.bf16 (!%p1976_p11), %v673_v16, %v671_v15  ;;  %2137 = vmatprep.subr.bf16.mxu0 (!%p1976_p11), %v3420_v13  ;;  %v3428_v19 = vpack.c.bf16 (!%p1976_p11), %v678_v18, %v676_v17  ;;  %v710_v15 = vld [vmem:[#allocation8 + $0x1b8] sm:$0xff] (!%p1976_p11)  ;;  %v3493_v16 = vpack.c.bf16 (!%p1976_p11), %v705_v10, %v703_v9  ;;  %v707_v18 = vld [vmem:[#allocation8 + $0x1a0] sm:$0xff] (!%p1976_p11) }
 0x109   : > { %v3496_v17 = vpack.c.bf16 (!%p1976_p11), %v710_v15, %v708_v11  ;;  %v3605_v9 = vpack.c.bf16 (!%p1976_p11), %v1273_v4, %v1271_v3  ;;  %v1275_v11 = vld [vmem:[#allocation8 + $0x60] sm:$0xff] (!%p1976_p11)  ;;  %v1277_v15 = vld [vmem:[#allocation8 + $0x70] sm:$0xff] (!%p1976_p11) }
 0x10a   : > { %v1311_v4 = vld [vmem:[#allocation8 + $0x180] sm:$0xff] (!%p1976_p11) }
 0x10b   : > { %2083 = vmatpush1.bf16.msra.mxu1 %v2082_v23  ;;  %v682_v23 = vld [vmem:[#allocation8 + $0xd8] sm:$0xff] (!%p1976_p11)  ;;  %2139 = vmatpush1.bf16.msra.mxu0 (!%p1976_p11), %v3424_v14 }
 0x10c   : > { %2085 = vmatprep.subr.bf16.mxu1 %v2084_v24  ;;  %v3432_v24 = vpack.c.bf16 (!%p1976_p11), %v677_v21, %v675_v20  ;;  %2141 = vmatprep.subr.bf16.mxu0 (!%p1976_p11), %v3428_v19  ;;  %v3436_v26 = vpack.c.bf16 (!%p1976_p11), %v682_v23, %v680_v22  ;;  %v709_v20 = vld [vmem:[#allocation8 + $0x1b0] sm:$0xff] (!%p1976_p11)  ;;  %v712_v21 = vld [vmem:[#allocation8 + $0x1c8] sm:$0xff] (!%p1976_p11)  ;;  %v714_v22 = vld [vmem:[#allocation8 + $0x1d8] sm:$0xff] (!%p1976_p11) }
 0x10d   : > { %v3501_v23 = vpack.c.bf16 (!%p1976_p11), %v709_v20, %v707_v18  ;;  %v3611_v18 = vpack.c.bf16 (!%p1976_p11), %v1277_v15, %v1275_v11  ;;  %v1318_v11 = vld [vmem:[#allocation8 + $0x1b8] sm:$0xff] (!%p1976_p11) }
 0x10f   : > { %2087 = vmatpush1.bf16.msra.mxu1 %v2086_v27  ;;  %v681_v27 = vld [vmem:[#allocation8 + $0xd0] sm:$0xff] (!%p1976_p11)  ;;  %2143 = vmatpush1.bf16.msra.mxu0 (!%p1976_p11), %v3432_v24 }
 0x110   : > { %2185 = vmatprep.subr.bf16.mxu1 (!%p1976_p11), %v3391_v54  ;;  %2145 = vmatprep.subr.bf16.mxu0 (!%p1976_p11), %v3436_v26 }
 0x112   : > { %546 = vmatmul.mubr.f32.vlgmr.msra.gmra.mrb[0].mxu1 %v379_v28 }
 0x113   : > { %551 = vmatprep.mubr.f32.mxu1 %v383_v29  ;;  %2187 = vmatpush1.bf16.msra.mxu1 (!%p1976_p11), %v3393_v58 }
 0x114   : > { %2189 = vmatprep.subr.bf16.mxu1 (!%p1976_p11), %v3395_v59 }
 0x116   : > { %552 = vmatmul.mubr.f32.gmra.mrb[2].mxu1 %v382_v30  ;;  %v684_v30 = vld [vmem:[#allocation8 + $0xe8] sm:$0xff] (!%p1976_p11) }
 0x117   : > { %2191 = vmatpush1.bf16.msra.mxu1 (!%p1976_p11), %v3400_v0 }
 0x118   : > { %2193 = vmatprep.subr.bf16.mxu1 (!%p1976_p11), %v3404_v1 }
 0x11b   : > { %2195 = vmatpush1.bf16.msra.mxu1 (!%p1976_p11), %v3408_v6 }
 0x11c   : > { %2197 = vmatprep.subr.bf16.mxu1 (!%p1976_p11), %v3412_v7 }
 0x11f   : > { %2199 = vmatpush1.bf16.msra.mxu1 (!%p1976_p11), %v3416_v12 }
 0x120   : > { %2201 = vmatprep.subr.bf16.mxu1 (!%p1976_p11), %v3420_v13 }
 0x123   : > { %2203 = vmatpush1.bf16.msra.mxu1 (!%p1976_p11), %v3424_v14 }
 0x124   : > { %2205 = vmatprep.subr.bf16.mxu1 (!%p1976_p11), %v3428_v19 }
 0x127   : > { %2207 = vmatpush1.bf16.msra.mxu1 (!%p1976_p11), %v3432_v24 }
 0x128   : > { %2209 = vmatprep.subr.bf16.mxu1 (!%p1976_p11), %v3436_v26 }
 0x1cb   : > { %v624_v31 = vpop.f32.mrb[0].mxu0 }
 0x1cc   : > { %v626_v32 = vpop.f32.mrb[1].mxu0 }
 0x1cf   : > { %v630_v33 = vpop.f32.mrb[2].mxu0 }
 0x1d0   : > { %v632_v34 = vpop.f32.mrb[3].mxu0 }
 0x1e5   : > { %v547_v36 = vpop.f32.mrb[0].mxu1 }
 0x1e6   : > { %v625_v37 = vadd.f32 %v624_v31, %v547_v36  ;;  %v549_v39 = vpop.f32.mrb[1].mxu1  ;;  %v686_v31 = vld [vmem:[#allocation8 + $0xf8] sm:$0xff] (!%p1976_p11)  ;;  %v683_v36 = vld [vmem:[#allocation8 + $0xe0] sm:$0xff] (!%p1976_p11) }
 0x1e7   : > { %v627_v40 = vadd.f32 %v626_v32, %v549_v39  ;;  %v690_v39 = vld [vmem:[#allocation8 + $0x118] sm:$0xff] (!%p1976_p11) }
 0x1e8   : > { %v635_v41 = vadd.f32 %v625_v37, %v375_v35  ;;  %v3448_v35 = vpack.c.bf16 (!%p1976_p11), %v686_v31, %v684_v30  ;;  %v685_v37 = vld [vmem:[#allocation8 + $0xf0] sm:$0xff] (!%p1976_p11)  ;;  %v716_v30 = vld [vmem:[#allocation8 + $0x1e8] sm:$0xff] (!%p1976_p11)  ;;  %v718_v31 = vld [vmem:[#allocation8 + $0x1f8] sm:$0xff] (!%p1976_p11) }
 0x1e9   : > { %v636_v42 = vadd.f32 %v627_v40, %v376_v38  ;;  %v553_v44 = vpop.f32.mrb[2].mxu1  ;;  %646 = sbr.rel (%p1976_p11) target bundleno = 2306 (0x902), region = 76  ;;  %v688_v38 = vld [vmem:[#allocation8 + $0x108] sm:$0xff] (!%p1976_p11)  ;;  %v3453_v40 = vpack.c.bf16 (!%p1976_p11), %v685_v37, %v683_v36  ;;  %v3512_v36 = vpack.c.bf16 (!%p1976_p11), %v718_v31, %v716_v30  ;;  %v715_v37 = vld [vmem:[#allocation8 + $0x1e0] sm:$0xff] (!%p1976_p11)  ;;  %v1285_v31 = vld [vmem:[#allocation8 + $0xb0] sm:$0xff] (!%p1976_p11) }
 0x1ea   : > { %639 = vst [vmem:[#allocation2] sm:$0xff] %v635_v41  ;;  %v631_v45 = vadd.f32 %v630_v33, %v553_v44  ;;  %v555_v47 = vpop.f32.mrb[3].mxu1  ;;  %v3456_v41 = vpack.c.bf16 (!%p1976_p11), %v690_v39, %v688_v38  ;;  %v692_v44 = vld [vmem:[#allocation8 + $0x128] sm:$0xff] (!%p1976_p11)  ;;  %v717_v38 = vld [vmem:[#allocation8 + $0x1f0] sm:$0xff] (!%p1976_p11)  ;;  %v1283_v30 = vld [vmem:[#allocation8 + $0xa0] sm:$0xff] (!%p1976_p11) }
 0x1eb   : > { %640 = vst [vmem:[#allocation2 + $0x8] sm:$0xff] %v636_v42  ;;  %v633_v48 = vadd.f32 %v632_v34, %v555_v47  ;;  %v3443_v34 = vpack.c.bf16 (!%p1976_p11), %v681_v27, %v679_v25  ;;  %v687_v42 = vld [vmem:[#allocation8 + $0x100] sm:$0xff] (!%p1976_p11)  ;;  %v3504_v25 = vpack.c.bf16 (!%p1976_p11), %v714_v22, %v712_v21  ;;  %v3517_v39 = vpack.c.bf16 (!%p1976_p11), %v717_v38, %v715_v37  ;;  %v1281_v22 = vld [vmem:[#allocation8 + $0x90] sm:$0xff] (!%p1976_p11) }
 0x1ec   : > { %v637_v49 = vadd.f32 %v631_v45, %v377_v43  ;;  %v689_v43 = vld [vmem:[#allocation8 + $0x110] sm:$0xff] (!%p1976_p11)  ;;  %v694_v45 = vld [vmem:[#allocation8 + $0x138] sm:$0xff] (!%p1976_p11)  ;;  %v711_v27 = vld [vmem:[#allocation8 + $0x1c0] sm:$0xff] (!%p1976_p11)  ;;  %v3623_v37 = vpack.c.bf16 (!%p1976_p11), %v1285_v31, %v1283_v30 }
 0x1ed   : > { %v638_v50 = vadd.f32 %v633_v48, %v378_v46  ;;  %2147 = vmatpush1.bf16.msra.mxu0 (!%p1976_p11), %v3443_v34  ;;  %2211 = vmatpush1.bf16.msra.mxu1 (!%p1976_p11), %v3443_v34  ;;  %v3461_v46 = vpack.c.bf16 (!%p1976_p11), %v689_v43, %v687_v42  ;;  %v3464_v47 = vpack.c.bf16 (!%p1976_p11), %v694_v45, %v692_v44  ;;  %v691_v48 = vld [vmem:[#allocation8 + $0x120] sm:$0xff] (!%p1976_p11) }
 0x1ee   : > { %641 = vst [vmem:[#allocation2 + $0x10] sm:$0xff] %v637_v49  ;;  %2149 = vmatprep.subr.bf16.mxu0 (!%p1976_p11), %v3448_v35  ;;  %2213 = vmatprep.subr.bf16.mxu1 (!%p1976_p11), %v3448_v35  ;;  %v693_v49 = vld [vmem:[#allocation8 + $0x130] sm:$0xff] (!%p1976_p11)  ;;  %v1279_v21 = vld [vmem:[#allocation8 + $0x80] sm:$0xff] (!%p1976_p11) }
 0x1ef   : > { %642 = vst [vmem:[#allocation2 + $0x18] sm:$0xff] %v638_v50  ;;  %v696_v50 = vld [vmem:[#allocation8 + $0x148] sm:$0xff] (!%p1976_p11)  ;;  %v3469_v52 = vpack.c.bf16 (!%p1976_p11), %v693_v49, %v691_v48 }
 0x1f0   : > { %v3472_v53 = vpack.c.bf16 %v698_v51, %v696_v50 }
 0x1f1   : > { %v3438_v29 = vld [vmem:[#allocation2] sm:$0x3]  ;;  %2151 = vmatpush1.bf16.msra.mxu0 %v3453_v40  ;;  %2215 = vmatpush1.bf16.msra.mxu1 %v3453_v40  ;;  %v957_v31 = vld [vmem:[#allocation2] sm:$0xc0] }
 0x1f2   : > { %v648_v28 = vld [vmem:[#allocation2 + $0x8] sm:$0x3]  ;;  %v649_v33 = vmax.f32 %v3438_v29, 0.0  ;;  %2153 = vmatprep.subr.bf16.mxu0 %v3456_v41  ;;  %2217 = vmatprep.subr.bf16.mxu1 %v3456_v41  ;;  %v654_v43 = vld [vmem:[#allocation2 + $0x8] sm:$0xc] }
 0x1f3   : > { %v650_v32 = vmax.f32 %v648_v28, 0.0  ;;  %v713_v28 = vld [vmem:[#allocation8 + $0x1d0] sm:$0xff] }
 0x1f4   : > { %651 = vst [vmem:[#allocation2] sm:$0x3] %v649_v33 }
 0x1f5   : > { %652 = vst [vmem:[#allocation2 + $0x8] sm:$0x3] %v650_v32  ;;  %783 = vmatprep.mubr.f32.mxu0 %v650_v32  ;;  %2155 = vmatpush1.bf16.msra.mxu0 %v3461_v46  ;;  %v3509_v32 = vpack.c.bf16 %v713_v28, %v711_v27  ;;  %v3617_v27 = vpack.c.bf16 %v1281_v22, %v1279_v21  ;;  %v1317_v21 = vld [vmem:[#allocation8 + $0x1b0] sm:$0xff]  ;;  %v1320_v22 = vld [vmem:[#allocation8 + $0x1c8] sm:$0xff] }
 0x1f6   : > { %2157 = vmatprep.subr.bf16.mxu0 %v3464_v47  ;;  %2219 = vmatpush1.bf16.msra.mxu1 %v3461_v46 }
 0x1f7   : > { %2221 = vmatprep.subr.bf16.mxu1 %v3464_v47 }
 0x1f9   : > { %2159 = vmatpush1.bf16.msra.mxu0 %v3469_v52 }
 0x1fa   : > { %2161 = vmatprep.subr.bf16.mxu0 %v3472_v53  ;;  %2223 = vmatpush1.bf16.msra.mxu1 %v3469_v52 }
 0x1fb   : > { %2225 = vmatprep.subr.bf16.mxu1 %v3472_v53 }
 0x1fd   : > { %2163 = vmatpush1.bf16.msra.mxu0 %v3477_v61 }
 0x1fe   : > { %2165 = vmatprep.subr.bf16.mxu0 %v3480_v62  ;;  %2227 = vmatpush1.bf16.msra.mxu1 %v3477_v61 }
 0x1ff   : > { %2229 = vmatprep.subr.bf16.mxu1 %v3480_v62 }
 0x201   : > { %2167 = vmatpush1.bf16.msra.mxu0 %v3485_v5 }
 0x202   : > { %2169 = vmatprep.subr.bf16.mxu0 %v3488_v8  ;;  %2231 = vmatpush1.bf16.msra.mxu1 %v3485_v5 }
 0x203   : > { %2233 = vmatprep.subr.bf16.mxu1 %v3488_v8 }
 0x205   : > { %2171 = vmatpush1.bf16.msra.mxu0 %v3493_v16 }
 0x206   : > { %2173 = vmatprep.subr.bf16.mxu0 %v3496_v17  ;;  %2235 = vmatpush1.bf16.msra.mxu1 %v3493_v16 }
 0x207   : > { %2237 = vmatprep.subr.bf16.mxu1 %v3496_v17 }
 0x209   : > { %2175 = vmatpush1.bf16.msra.mxu0 %v3501_v23 }
 0x20a   : > { %2177 = vmatprep.subr.bf16.mxu0 %v3504_v25  ;;  %2239 = vmatpush1.bf16.msra.mxu1 %v3501_v23 }
 0x20b   : > { %2241 = vmatprep.subr.bf16.mxu1 %v3504_v25 }
 0x20d   : > { %2179 = vmatpush1.bf16.msra.mxu0 %v3509_v32 }
 0x20e   : > { %2181 = vmatprep.subr.bf16.mxu0 %v3512_v36  ;;  %2243 = vmatpush1.bf16.msra.mxu1 %v3509_v32 }
 0x20f   : > { %2245 = vmatprep.subr.bf16.mxu1 %v3512_v36 }
 0x211   : > { %2183 = vmatpush1.bf16.msra.mxu0 %v3517_v39 }
 0x212   : > { %2247 = vmatpush1.bf16.msra.mxu1 %v3517_v39  ;;  %2249 = vmatprep.subr.bf16.mxu0 %v3391_v54 }
 0x213   : > { %2313 = vmatprep.subr.bf16.mxu1 %v3391_v54  ;;  %v653_v54 = vld [vmem:[#allocation2] sm:$0xc] }
 0x214   : > { %784 = vmatmul.mubr.f32.vlgmr.msra.gmra.mrb[0].mxu0 %v649_v33 }
 0x215   : > { %2251 = vmatpush1.bf16.msra.mxu0 %v3393_v58 }
 0x216   : > { %2253 = vmatprep.subr.bf16.mxu0 %v3395_v59 }
 0x219   : > { %2255 = vmatpush1.bf16.msra.mxu0 %v3400_v0 }
 0x21a   : > { %2257 = vmatprep.subr.bf16.mxu0 %v3404_v1 }
 0x21d   : > { %2259 = vmatpush1.bf16.msra.mxu0 %v3408_v6 }
 0x21e   : > { %2261 = vmatprep.subr.bf16.mxu0 %v3412_v7 }
 0x221   : > { %2263 = vmatpush1.bf16.msra.mxu0 %v3416_v12 }
 0x222   : > { %2265 = vmatprep.subr.bf16.mxu0 %v3420_v13 }
 0x225   : > { %2267 = vmatpush1.bf16.msra.mxu0 %v3424_v14 }
 0x226   : > { %2269 = vmatprep.subr.bf16.mxu0 %v3428_v19 }
 0x229   : > { %2271 = vmatpush1.bf16.msra.mxu0 %v3432_v24 }
 0x22a   : > { %2273 = vmatprep.subr.bf16.mxu0 %v3436_v26 }
 0x22d   : > { %2275 = vmatpush1.bf16.msra.mxu0 %v3443_v34 }
 0x22e   : > { %2277 = vmatprep.subr.bf16.mxu0 %v3448_v35 }
 0x231   : > { %2279 = vmatpush1.bf16.msra.mxu0 %v3453_v40 }
 0x232   : > { %2281 = vmatprep.subr.bf16.mxu0 %v3456_v41 }
 0x235   : > { %2283 = vmatpush1.bf16.msra.mxu0 %v3461_v46 }
 0x236   : > { %2285 = vmatprep.subr.bf16.mxu0 %v3464_v47 }
 0x239   : > { %2287 = vmatpush1.bf16.msra.mxu0 %v3469_v52 }
 0x23a   : > { %2289 = vmatprep.subr.bf16.mxu0 %v3472_v53 }
 0x23d   : > { %2291 = vmatpush1.bf16.msra.mxu0 %v3477_v61 }
 0x23e   : > { %2293 = vmatprep.subr.bf16.mxu0 %v3480_v62 }
 0x241   : > { %2295 = vmatpush1.bf16.msra.mxu0 %v3485_v5 }
 0x242   : > { %2297 = vmatprep.subr.bf16.mxu0 %v3488_v8 }
 0x245   : > { %2299 = vmatpush1.bf16.msra.mxu0 %v3493_v16 }
 0x246   : > { %2301 = vmatprep.subr.bf16.mxu0 %v3496_v17 }
 0x249   : > { %2303 = vmatpush1.bf16.msra.mxu0 %v3501_v23 }
 0x24a   : > { %2305 = vmatprep.subr.bf16.mxu0 %v3504_v25 }
 0x24d   : > { %2307 = vmatpush1.bf16.msra.mxu0 %v3509_v32 }
 0x24e   : > { %2309 = vmatprep.subr.bf16.mxu0 %v3512_v36 }
 0x251   : > { %2311 = vmatpush1.bf16.msra.mxu0 %v3517_v39 }
 0x2e7   : > { %v785_v29 = vpop.f32.mrb[0].mxu0 }
 0x2e8   : > { %v792_v33 = vrot.slane %v785_v29, 6  ;;  %v787_v42 = vpop.f32.mrb[1].mxu0  ;;  %v1292_v29 = vld [vmem:[#allocation8 + $0xe8] sm:$0xff] }
 0x2e9   : > { %v793_v44 = vrot.slane %v787_v42, 6 }
 0x2ea   : > { %v796_v45 = vadd.f32 %v792_v33, %v653_v54  ;;  %v1289_v54 = vld [vmem:[#allocation8 + $0xd0] sm:$0xff]  ;;  %v1294_v33 = vld [vmem:[#allocation8 + $0xf8] sm:$0xff] }
 0x2eb   : > { %v797_v48 = vadd.f32 %v793_v44, %v654_v43  ;;  %v3632_v43 = vpack.c.bf16 %v1294_v33, %v1292_v29  ;;  %v1291_v44 = vld [vmem:[#allocation8 + $0xe0] sm:$0xff] }
 0x2ec   : > { %v798_v49 = vmax.f32 %v796_v45, 0.0  ;;  %v1293_v45 = vld [vmem:[#allocation8 + $0xf0] sm:$0xff] }
 0x2ed   : > { %v799_v50 = vmax.f32 %v797_v48, 0.0  ;;  %v1296_v48 = vld [vmem:[#allocation8 + $0x108] sm:$0xff] }
 0x2ee   : > { %800 = vst [vmem:[#allocation2] sm:$0xc] %v798_v49  ;;  %v870_v55 = vrot.slane %v798_v49, 2  ;;  %v1298_v49 = vld [vmem:[#allocation8 + $0x118] sm:$0xff] }
 0x2ef   : > { %801 = vst [vmem:[#allocation2 + $0x8] sm:$0xc] %v799_v50  ;;  %v871_v51 = vrot.slane %v799_v50, 2  ;;  %v3635_v50 = vpack.c.bf16 %v1293_v45, %v1291_v44 }
 0x2f1   : > { %938 = vmatprep.mubr.f32.mxu1 %v871_v51  ;;  %v3638_v51 = vpack.c.bf16 %v1298_v49, %v1296_v48 }
 0x2f2   : > { %939 = vmatmul.mubr.f32.vlgmr.msra.gmra.mrb[0].mxu1 %v870_v55  ;;  %v1295_v55 = vld [vmem:[#allocation8 + $0x100] sm:$0xff] }
 0x2f3   : > { %2315 = vmatpush1.bf16.msra.mxu1 %v3393_v58  ;;  %v802_v58 = vld [vmem:[#allocation2] sm:$0x30] }
 0x2f4   : > { %2317 = vmatprep.subr.bf16.mxu1 %v3395_v59 }
 0x2f7   : > { %2319 = vmatpush1.bf16.msra.mxu1 %v3400_v0 }
 0x2f8   : > { %2321 = vmatprep.subr.bf16.mxu1 %v3404_v1  ;;  %v803_v1 = vld [vmem:[#allocation2 + $0x8] sm:$0x30] }
 0x2fb   : > { %2323 = vmatpush1.bf16.msra.mxu1 %v3408_v6 }
 0x2fc   : > { %2325 = vmatprep.subr.bf16.mxu1 %v3412_v7 }
 0x2ff   : > { %2327 = vmatpush1.bf16.msra.mxu1 %v3416_v12 }
 0x300   : > { %2329 = vmatprep.subr.bf16.mxu1 %v3420_v13 }
 0x303   : > { %2331 = vmatpush1.bf16.msra.mxu1 %v3424_v14 }
 0x304   : > { %2333 = vmatprep.subr.bf16.mxu1 %v3428_v19 }
 0x307   : > { %2335 = vmatpush1.bf16.msra.mxu1 %v3432_v24 }
 0x308   : > { %2337 = vmatprep.subr.bf16.mxu1 %v3436_v26 }
 0x30b   : > { %2339 = vmatpush1.bf16.msra.mxu1 %v3443_v34  ;;  %v1264_v34 = vld [vmem:[#allocation8 + $0x8] sm:$0xff] }
 0x30c   : > { %2341 = vmatprep.subr.bf16.mxu1 %v3448_v35  ;;  %v1266_v35 = vld [vmem:[#allocation8 + $0x18] sm:$0xff] }
 0x30f   : > { %2343 = vmatpush1.bf16.msra.mxu1 %v3453_v40  ;;  %v1263_v40 = vld [vmem:[#allocation8] sm:$0xff] }
 0x310   : > { %2345 = vmatprep.subr.bf16.mxu1 %v3456_v41  ;;  %v3590_v41 = vpack.c.bf16 %v1266_v35, %v1264_v34  ;;  %v1305_v34 = vld [vmem:[#allocation8 + $0x150] sm:$0xff]  ;;  %v1308_v35 = vld [vmem:[#allocation8 + $0x168] sm:$0xff] }
 0x312   : > { %2377 = vmatprep.subr.bf16.mxu0 %v3590_v41 }
 0x313   : > { %2347 = vmatpush1.bf16.msra.mxu1 %v3461_v46  ;;  %v1265_v46 = vld [vmem:[#allocation8 + $0x10] sm:$0xff] }
 0x314   : > { %2349 = vmatprep.subr.bf16.mxu1 %v3464_v47  ;;  %v1268_v47 = vld [vmem:[#allocation8 + $0x28] sm:$0xff] }
 0x317   : > { %2351 = vmatpush1.bf16.msra.mxu1 %v3469_v52  ;;  %v1270_v52 = vld [vmem:[#allocation8 + $0x38] sm:$0xff] }
 0x318   : > { %2353 = vmatprep.subr.bf16.mxu1 %v3472_v53  ;;  %v3592_v53 = vpack.c.bf16 %v1265_v46, %v1263_v40  ;;  %v3594_v56 = vpack.c.bf16 %v1270_v52, %v1268_v47  ;;  %v1310_v40 = vld [vmem:[#allocation8 + $0x178] sm:$0xff]  ;;  %v1307_v52 = vld [vmem:[#allocation8 + $0x160] sm:$0xff] }
 0x319   : > { %v3656_v47 = vpack.c.bf16 %v1310_v40, %v1308_v35  ;;  %v1112_v35 = vld [vmem:[#allocation2 + $0x10] sm:$0x3]  ;;  %v1113_v40 = vld [vmem:[#allocation2 + $0x18] sm:$0x3] }
 0x31b   : > { %2355 = vmatpush1.bf16.msra.mxu1 %v3477_v61  ;;  %v1272_v61 = vld [vmem:[#allocation8 + $0x48] sm:$0xff] }
 0x31c   : > { %2357 = vmatprep.subr.bf16.mxu1 %v3480_v62  ;;  %v1274_v62 = vld [vmem:[#allocation8 + $0x58] sm:$0xff] }
 0x31d   : > { %v3602_v2 = vpack.c.bf16 %v1274_v62, %v1272_v61  ;;  %v1314_v61 = vld [vmem:[#allocation8 + $0x198] sm:$0xff]  ;;  %v3659_v62 = vpack.c.bf16 %v1309_v57, %v1307_v52 }
 0x31e   : > { %v3662_v3 = vpack.c.bf16 %v1314_v61, %v1312_v60 }
 0x31f   : > { %2359 = vmatpush1.bf16.msra.mxu1 %v3485_v5  ;;  %v1276_v5 = vld [vmem:[#allocation8 + $0x68] sm:$0xff] }
 0x320   : > { %2361 = vmatprep.subr.bf16.mxu1 %v3488_v8  ;;  %v1278_v8 = vld [vmem:[#allocation8 + $0x78] sm:$0xff] }
 0x321   : > { %v3608_v10 = vpack.c.bf16 %v1278_v8, %v1276_v5  ;;  %v1313_v5 = vld [vmem:[#allocation8 + $0x190] sm:$0xff]  ;;  %v1316_v8 = vld [vmem:[#allocation8 + $0x1a8] sm:$0xff] }
 0x322   : > { %v3665_v15 = vpack.c.bf16 %v1313_v5, %v1311_v4 }
 0x323   : > { %2363 = vmatpush1.bf16.msra.mxu1 %v3493_v16  ;;  %v1280_v16 = vld [vmem:[#allocation8 + $0x88] sm:$0xff] }
 0x324   : > { %2365 = vmatprep.subr.bf16.mxu1 %v3496_v17  ;;  %v1282_v17 = vld [vmem:[#allocation8 + $0x98] sm:$0xff] }
 0x325   : > { %v3614_v20 = vpack.c.bf16 %v1282_v17, %v1280_v16  ;;  %v3668_v16 = vpack.c.bf16 %v1318_v11, %v1316_v8  ;;  %v1315_v17 = vld [vmem:[#allocation8 + $0x1a0] sm:$0xff] }
 0x327   : > { %2367 = vmatpush1.bf16.msra.mxu1 %v3501_v23  ;;  %v1284_v23 = vld [vmem:[#allocation8 + $0xa8] sm:$0xff] }
 0x328   : > { %2369 = vmatprep.subr.bf16.mxu1 %v3504_v25  ;;  %v1286_v25 = vld [vmem:[#allocation8 + $0xb8] sm:$0xff] }
 0x329   : > { %v3620_v28 = vpack.c.bf16 %v1286_v25, %v1284_v23  ;;  %v1322_v23 = vld [vmem:[#allocation8 + $0x1d8] sm:$0xff]  ;;  %v3671_v25 = vpack.c.bf16 %v1317_v21, %v1315_v17  ;;  %v1729_v17 = vld [vmem:[#allocation11 + $0x28] sm:$0xff] }
 0x32a   : > { %v3674_v30 = vpack.c.bf16 %v1322_v23, %v1320_v22  ;;  %v1746_v21 = vld [vmem:[#allocation11 + $0xb0] sm:$0xff]  ;;  %v1747_v22 = vld [vmem:[#allocation11 + $0xb8] sm:$0xff] }
 0x32b   : > { %2371 = vmatpush1.bf16.msra.mxu1 %v3509_v32  ;;  %v1288_v32 = vld [vmem:[#allocation8 + $0xc8] sm:$0xff] }
 0x32c   : > { %2373 = vmatprep.subr.bf16.mxu1 %v3512_v36  ;;  %v1290_v36 = vld [vmem:[#allocation8 + $0xd8] sm:$0xff] }
 0x32d   : > { %v3626_v38 = vpack.c.bf16 %v1290_v36, %v1288_v32 }
 0x32f   : > { %2375 = vmatpush1.bf16.msra.mxu1 %v3517_v39  ;;  %v1287_v39 = vld [vmem:[#allocation8 + $0xc0] sm:$0xff] }
 0x330   : > { %2441 = vmatprep.subr.bf16.mxu1 %v3590_v41  ;;  %v3629_v42 = vpack.c.bf16 %v1289_v54, %v1287_v39  ;;  %v958_v39 = vld [vmem:[#allocation2 + $0x8] sm:$0xc0] }
 0x3c5   : > { %v940_v59 = vpop.f32.mrb[0].mxu1 }
 0x3c6   : > { %v947_v0 = vrot.slane %v940_v59, 4  ;;  %v942_v6 = vpop.f32.mrb[1].mxu1  ;;  %v1300_v59 = vld [vmem:[#allocation8 + $0x128] sm:$0xff] }
 0x3c7   : > { %v948_v7 = vrot.slane %v942_v6, 4 }
 0x3c8   : > { %v951_v12 = vadd.f32 %v947_v0, %v802_v58  ;;  %v1297_v58 = vld [vmem:[#allocation8 + $0x110] sm:$0xff]  ;;  %v1302_v0 = vld [vmem:[#allocation8 + $0x138] sm:$0xff] }
 0x3c9   : > { %v952_v13 = vadd.f32 %v948_v7, %v803_v1  ;;  %v3641_v1 = vpack.c.bf16 %v1297_v58, %v1295_v55  ;;  %v3644_v6 = vpack.c.bf16 %v1302_v0, %v1300_v59  ;;  %v1299_v7 = vld [vmem:[#allocation8 + $0x120] sm:$0xff]  ;;  %v1321_v59 = vld [vmem:[#allocation8 + $0x1d0] sm:$0xff] }
 0x3ca   : > { %v953_v14 = vmax.f32 %v951_v12, 0.0  ;;  %v1301_v12 = vld [vmem:[#allocation8 + $0x130] sm:$0xff]  ;;  %v1319_v58 = vld [vmem:[#allocation8 + $0x1c0] sm:$0xff] }
 0x3cb   : > { %v954_v19 = vmax.f32 %v952_v13, 0.0  ;;  %v1304_v13 = vld [vmem:[#allocation8 + $0x148] sm:$0xff]  ;;  %v2434_v0 = vpack.c.bf16 %v1321_v59, %v1319_v58  ;;  %v1735_v58 = vld [vmem:[#allocation11 + $0x58] sm:$0xff] }
 0x3cc   : > { %955 = vst [vmem:[#allocation2] sm:$0x30] %v953_v14  ;;  %v1025_v26 = vrot.slane %v953_v14, 4  ;;  %v1306_v14 = vld [vmem:[#allocation8 + $0x158] sm:$0xff]  ;;  %v1752_v59 = vld [vmem:[#allocation11 + $0xe0] sm:$0xff] }
 0x3cd   : > { %956 = vst [vmem:[#allocation2 + $0x8] sm:$0x30] %v954_v19  ;;  %v1026_v24 = vrot.slane %v954_v19, 4  ;;  %v3647_v19 = vpack.c.bf16 %v1301_v12, %v1299_v7  ;;  %v1324_v7 = vld [vmem:[#allocation8 + $0x1e8] sm:$0xff]  ;;  %v1326_v12 = vld [vmem:[#allocation8 + $0x1f8] sm:$0xff] }
 0x3cf   : > { %1093 = vmatprep.mubr.f32.mxu0 %v1026_v24  ;;  %v3650_v24 = vpack.c.bf16 %v1306_v14, %v1304_v13  ;;  %v2436_v13 = vpack.c.bf16 %v1326_v12, %v1324_v7  ;;  %v1323_v14 = vld [vmem:[#allocation8 + $0x1e0] sm:$0xff] }
 0x3d0   : > { %1094 = vmatmul.mubr.f32.vlgmr.msra.gmra.mrb[2].mxu0 %v1025_v26  ;;  %v1303_v26 = vld [vmem:[#allocation8 + $0x140] sm:$0xff] }
 0x3d1   : > { %2379 = vmatpush1.bf16.msra.mxu0 %v3592_v53  ;;  %v3653_v46 = vpack.c.bf16 %v1305_v34, %v1303_v26  ;;  %v1325_v26 = vld [vmem:[#allocation8 + $0x1f0] sm:$0xff] }
 0x3d2   : > { %2381 = vmatprep.subr.bf16.mxu0 %v3594_v56  ;;  %v2438_v34 = vpack.c.bf16 %v1325_v26, %v1323_v14  ;;  %v1737_v14 = vld [vmem:[#allocation11 + $0x68] sm:$0xff]  ;;  %v1754_v26 = vld [vmem:[#allocation11 + $0xf0] sm:$0xff] }
 0x3d5   : > { %2383 = vmatpush1.bf16.msra.mxu0 %v3599_v63 }
 0x3d6   : > { %2385 = vmatprep.subr.bf16.mxu0 %v3602_v2 }
 0x3d9   : > { %2387 = vmatpush1.bf16.msra.mxu0 %v3605_v9 }
 0x3da   : > { %2389 = vmatprep.subr.bf16.mxu0 %v3608_v10 }
 0x3dd   : > { %2391 = vmatpush1.bf16.msra.mxu0 %v3611_v18 }
 0x3de   : > { %2393 = vmatprep.subr.bf16.mxu0 %v3614_v20 }
 0x3e1   : > { %2395 = vmatpush1.bf16.msra.mxu0 %v3617_v27 }
 0x3e2   : > { %2397 = vmatprep.subr.bf16.mxu0 %v3620_v28 }
 0x3e5   : > { %2399 = vmatpush1.bf16.msra.mxu0 %v3623_v37 }
 0x3e6   : > { %2401 = vmatprep.subr.bf16.mxu0 %v3626_v38 }
 0x3e9   : > { %2403 = vmatpush1.bf16.msra.mxu0 %v3629_v42 }
 0x3ea   : > { %2405 = vmatprep.subr.bf16.mxu0 %v3632_v43 }
 0x3ed   : > { %2407 = vmatpush1.bf16.msra.mxu0 %v3635_v50 }
 0x3ee   : > { %2409 = vmatprep.subr.bf16.mxu0 %v3638_v51 }
 0x3f1   : > { %2411 = vmatpush1.bf16.msra.mxu0 %v3641_v1 }
 0x3f2   : > { %2413 = vmatprep.subr.bf16.mxu0 %v3644_v6 }
 0x3f5   : > { %2415 = vmatpush1.bf16.msra.mxu0 %v3647_v19 }
 0x3f6   : > { %2417 = vmatprep.subr.bf16.mxu0 %v3650_v24 }
 0x3f9   : > { %2419 = vmatpush1.bf16.msra.mxu0 %v3653_v46 }
 0x3fa   : > { %2421 = vmatprep.subr.bf16.mxu0 %v3656_v47 }
 0x3fd   : > { %2423 = vmatpush1.bf16.msra.mxu0 %v3659_v62 }
 0x3fe   : > { %2425 = vmatprep.subr.bf16.mxu0 %v3662_v3 }
 0x401   : > { %2427 = vmatpush1.bf16.msra.mxu0 %v3665_v15 }
 0x402   : > { %2429 = vmatprep.subr.bf16.mxu0 %v3668_v16 }
 0x405   : > { %2431 = vmatpush1.bf16.msra.mxu0 %v3671_v25 }
 0x406   : > { %2433 = vmatprep.subr.bf16.mxu0 %v3674_v30 }
 0x409   : > { %2435 = vmatpush1.bf16.msra.mxu0 %v2434_v0 }
 0x40a   : > { %2437 = vmatprep.subr.bf16.mxu0 %v2436_v13 }
 0x40d   : > { %2439 = vmatpush1.bf16.msra.mxu0 %v2438_v34 }
 0x40e   : > { %2505 = vmatprep.subr.bf16.mxu0 %v3590_v41  ;;  %v1740_v41 = vld [vmem:[#allocation11 + $0x80] sm:$0xff] }
 0x4a3   : > { %v1095_v32 = vpop.f32.mrb[2].mxu0 }
 0x4a4   : > { %v1102_v36 = vrot.slane %v1095_v32, 2  ;;  %v1097_v54 = vpop.f32.mrb[3].mxu0  ;;  %v1748_v32 = vld [vmem:[#allocation11 + $0xc0] sm:$0xff] }
 0x4a5   : > { %v1103_v29 = vrot.slane %v1097_v54, 2 }
 0x4a6   : > { %v1106_v33 = vadd.f32 %v1102_v36, %v957_v31  ;;  %v1731_v31 = vld [vmem:[#allocation11 + $0x38] sm:$0xff]  ;;  %v1749_v36 = vld [vmem:[#allocation11 + $0xc8] sm:$0xff] }
 0x4a7   : > { %v1107_v44 = vadd.f32 %v1103_v29, %v958_v39  ;;  %v2584_v54 = vpack.c.bf16 %v1749_v36, %v1748_v32  ;;  %v1732_v29 = vld [vmem:[#allocation11 + $0x40] sm:$0xff] }
 0x4a8   : > { %v1108_v45 = vmax.f32 %v1106_v33, 0.0  ;;  %v1733_v33 = vld [vmem:[#allocation11 + $0x48] sm:$0xff] }
 0x4a9   : > { %v1109_v48 = vmax.f32 %v1107_v44, 0.0  ;;  %v1750_v44 = vld [vmem:[#allocation11 + $0xd0] sm:$0xff] }
 0x4aa   : > { %1110 = vst [vmem:[#allocation2] sm:$0xc0] %v1108_v45  ;;  %v1180_v55 = vrot.slane %v1108_v45, 6  ;;  %v1751_v45 = vld [vmem:[#allocation11 + $0xd8] sm:$0xff] }
 0x4ab   : > { %1111 = vst [vmem:[#allocation2 + $0x8] sm:$0xc0] %v1109_v48  ;;  %v1181_v49 = vrot.slane %v1109_v48, 6  ;;  %v2586_v48 = vpack.c.bf16 %v1733_v33, %v1732_v29 }
 0x4ad   : > { %1248 = vmatprep.mubr.f32.mxu1 %v1181_v49  ;;  %v2588_v49 = vpack.c.bf16 %v1751_v45, %v1750_v44 }
 0x4ae   : > { %1249 = vmatmul.mubr.f32.vlgmr.msra.gmra.mrb[2].mxu1 %v1180_v55  ;;  %v1734_v55 = vld [vmem:[#allocation11 + $0x50] sm:$0xff] }
 0x4af   : > { %2443 = vmatpush1.bf16.msra.mxu1 %v3592_v53  ;;  %v2590_v7 = vpack.c.bf16 %v1735_v58, %v1734_v55 }
 0x4b0   : > { %2445 = vmatprep.subr.bf16.mxu1 %v3594_v56 }
 0x4b2   : > { %v1721_v8 = vld [vmem:[#allocation2 + $0x8] sm:$0xff] }
 0x4b3   : > { %2447 = vmatpush1.bf16.msra.mxu1 %v3599_v63 }
 0x4b4   : > { %2449 = vmatprep.subr.bf16.mxu1 %v3602_v2 }
 0x4b7   : > { %2451 = vmatpush1.bf16.msra.mxu1 %v3605_v9 }
 0x4b8   : > { %2453 = vmatprep.subr.bf16.mxu1 %v3608_v10 }
 0x4bb   : > { %2455 = vmatpush1.bf16.msra.mxu1 %v3611_v18 }
 0x4bc   : > { %2457 = vmatprep.subr.bf16.mxu1 %v3614_v20 }
 0x4bf   : > { %2459 = vmatpush1.bf16.msra.mxu1 %v3617_v27 }
 0x4c0   : > { %2461 = vmatprep.subr.bf16.mxu1 %v3620_v28 }
 0x4c3   : > { %2463 = vmatpush1.bf16.msra.mxu1 %v3623_v37 }
 0x4c4   : > { %2465 = vmatprep.subr.bf16.mxu1 %v3626_v38 }
 0x4c7   : > { %2467 = vmatpush1.bf16.msra.mxu1 %v3629_v42 }
 0x4c8   : > { %2469 = vmatprep.subr.bf16.mxu1 %v3632_v43 }
 0x4cb   : > { %2471 = vmatpush1.bf16.msra.mxu1 %v3635_v50 }
 0x4cc   : > { %2473 = vmatprep.subr.bf16.mxu1 %v3638_v51 }
 0x4cf   : > { %2475 = vmatpush1.bf16.msra.mxu1 %v3641_v1 }
 0x4d0   : > { %2477 = vmatprep.subr.bf16.mxu1 %v3644_v6 }
 0x4d3   : > { %2479 = vmatpush1.bf16.msra.mxu1 %v3647_v19 }
 0x4d4   : > { %2481 = vmatprep.subr.bf16.mxu1 %v3650_v24 }
 0x4d7   : > { %2483 = vmatpush1.bf16.msra.mxu1 %v3653_v46 }
 0x4d8   : > { %2485 = vmatprep.subr.bf16.mxu1 %v3656_v47 }
 0x4db   : > { %2487 = vmatpush1.bf16.msra.mxu1 %v3659_v62 }
 0x4dc   : > { %2489 = vmatprep.subr.bf16.mxu1 %v3662_v3 }
 0x4df   : > { %2491 = vmatpush1.bf16.msra.mxu1 %v3665_v15 }
 0x4e0   : > { %2493 = vmatprep.subr.bf16.mxu1 %v3668_v16 }
 0x4e3   : > { %2495 = vmatpush1.bf16.msra.mxu1 %v3671_v25 }
 0x4e4   : > { %2497 = vmatprep.subr.bf16.mxu1 %v3674_v30 }
 0x4e7   : > { %2499 = vmatpush1.bf16.msra.mxu1 %v2434_v0 }
 0x4e8   : > { %2501 = vmatprep.subr.bf16.mxu1 %v2436_v13 }
 0x4eb   : > { %2503 = vmatpush1.bf16.msra.mxu1 %v2438_v34 }
 0x581   : > { %v1250_v52 = vpop.f32.mrb[2].mxu1 }
 0x582   : > { %v1255_v57 = vadd.f32 %v1250_v52, %v1112_v35  ;;  %v1252_v60 = vpop.f32.mrb[3].mxu1  ;;  %v1738_v52 = vld [vmem:[#allocation11 + $0x70] sm:$0xff] }
 0x583   : > { %v1256_v61 = vadd.f32 %v1252_v60, %v1113_v40 }
 0x584   : > { %v1257_v4 = vmax.f32 %v1255_v57, 0.0  ;;  %v1739_v57 = vld [vmem:[#allocation11 + $0x78] sm:$0xff] }
 0x585   : > { %v1258_v5 = vmax.f32 %v1256_v61, 0.0  ;;  %v2598_v60 = vpack.c.bf16 %v1739_v57, %v1738_v52  ;;  %v1720_v61 = vld [vmem:[#allocation2] sm:$0xff] }
 0x586   : > { %1259 = vst [vmem:[#allocation2 + $0x10] sm:$0x3] %v1257_v4 }
 0x587   : > { %1260 = vst [vmem:[#allocation2 + $0x18] sm:$0x3] %v1258_v5  ;;  %1391 = vmatprep.mubr.f32.mxu0 %v1258_v5 }
 0x588   : > { %1392 = vmatmul.mubr.f32.vlgmr.msra.gmra.mrb[4].mxu0 %v1257_v4  ;;  %v1410_v4 = vld [vmem:[#allocation2 + $0x10] sm:$0x30] }
 0x589   : > { %2507 = vmatpush1.bf16.msra.mxu0 %v3592_v53  ;;  %v1741_v53 = vld [vmem:[#allocation11 + $0x88] sm:$0xff] }
 0x58a   : > { %2509 = vmatprep.subr.bf16.mxu0 %v3594_v56  ;;  %v2568_v56 = vpack.c.bf16 %v1741_v53, %v1740_v41  ;;  %v1411_v53 = vld [vmem:[#allocation2 + $0x18] sm:$0x30] }
 0x58c   : > { %2569 = vmatprep.subr.bf16.mxu1 %v2568_v56 }
 0x58d   : > { %2511 = vmatpush1.bf16.msra.mxu0 %v3599_v63  ;;  %v1261_v63 = vld [vmem:[#allocation2 + $0x10] sm:$0xc] }
 0x58e   : > { %2513 = vmatprep.subr.bf16.mxu0 %v3602_v2 }
 0x591   : > { %2515 = vmatpush1.bf16.msra.mxu0 %v3605_v9 }
 0x592   : > { %2517 = vmatprep.subr.bf16.mxu0 %v3608_v10  ;;  %v1262_v10 = vld [vmem:[#allocation2 + $0x18] sm:$0xc] }
 0x595   : > { %2519 = vmatpush1.bf16.msra.mxu0 %v3611_v18 }
 0x596   : > { %2521 = vmatprep.subr.bf16.mxu0 %v3614_v20 }
 0x599   : > { %2523 = vmatpush1.bf16.msra.mxu0 %v3617_v27 }
 0x59a   : > { %2525 = vmatprep.subr.bf16.mxu0 %v3620_v28 }
 0x59d   : > { %2527 = vmatpush1.bf16.msra.mxu0 %v3623_v37 }
 0x59e   : > { %2529 = vmatprep.subr.bf16.mxu0 %v3626_v38  ;;  %v1724_v38 = vld [vmem:[#allocation11] sm:$0xff] }
 0x5a1   : > { %2531 = vmatpush1.bf16.msra.mxu0 %v3629_v42  ;;  %v1725_v42 = vld [vmem:[#allocation11 + $0x8] sm:$0xff] }
 0x5a2   : > { %2533 = vmatprep.subr.bf16.mxu0 %v3632_v43 }
 0x5a5   : > { %2535 = vmatpush1.bf16.msra.mxu0 %v3635_v50  ;;  %v1742_v50 = vld [vmem:[#allocation11 + $0x90] sm:$0xff] }
 0x5a6   : > { %2537 = vmatprep.subr.bf16.mxu0 %v3638_v51  ;;  %v1743_v51 = vld [vmem:[#allocation11 + $0x98] sm:$0xff] }
 0x5a9   : > { %2539 = vmatpush1.bf16.msra.mxu0 %v3641_v1 }
 0x5aa   : > { %2541 = vmatprep.subr.bf16.mxu0 %v3644_v6  ;;  %v2570_v6 = vpack.c.bf16 %v1725_v42, %v1724_v38 }
 0x5ad   : > { %2543 = vmatpush1.bf16.msra.mxu0 %v3647_v19 }
 0x5ae   : > { %2545 = vmatprep.subr.bf16.mxu0 %v3650_v24  ;;  %v2572_v24 = vpack.c.bf16 %v1743_v51, %v1742_v50  ;;  %v1565_v50 = vld [vmem:[#allocation2 + $0x10] sm:$0xc0] }
 0x5b1   : > { %2547 = vmatpush1.bf16.msra.mxu0 %v3653_v46  ;;  %v1726_v46 = vld [vmem:[#allocation11 + $0x10] sm:$0xff] }
 0x5b2   : > { %2549 = vmatprep.subr.bf16.mxu0 %v3656_v47  ;;  %v1727_v47 = vld [vmem:[#allocation11 + $0x18] sm:$0xff] }
 0x5b3   : > { %v2574_v11 = vpack.c.bf16 %v1727_v47, %v1726_v46 }
 0x5b5   : > { %2551 = vmatpush1.bf16.msra.mxu0 %v3659_v62  ;;  %v1744_v62 = vld [vmem:[#allocation11 + $0xa0] sm:$0xff] }
 0x5b6   : > { %2553 = vmatprep.subr.bf16.mxu0 %v3662_v3  ;;  %v1745_v3 = vld [vmem:[#allocation11 + $0xa8] sm:$0xff] }
 0x5b9   : > { %2555 = vmatpush1.bf16.msra.mxu0 %v3665_v15  ;;  %v2576_v15 = vpack.c.bf16 %v1745_v3, %v1744_v62 }
 0x5ba   : > { %2557 = vmatprep.subr.bf16.mxu0 %v3668_v16  ;;  %v1728_v16 = vld [vmem:[#allocation11 + $0x20] sm:$0xff] }
 0x5bb   : > { %v2578_v23 = vpack.c.bf16 %v1729_v17, %v1728_v16 }
 0x5bd   : > { %2559 = vmatpush1.bf16.msra.mxu0 %v3671_v25  ;;  %v2580_v25 = vpack.c.bf16 %v1747_v22, %v1746_v21 }
 0x5be   : > { %2561 = vmatprep.subr.bf16.mxu0 %v3674_v30  ;;  %v1730_v30 = vld [vmem:[#allocation11 + $0x30] sm:$0xff] }
 0x5bf   : > { %v2582_v39 = vpack.c.bf16 %v1731_v31, %v1730_v30 }
 0x5c1   : > { %2563 = vmatpush1.bf16.msra.mxu0 %v2434_v0  ;;  %v1753_v0 = vld [vmem:[#allocation11 + $0xe8] sm:$0xff] }
 0x5c2   : > { %2565 = vmatprep.subr.bf16.mxu0 %v2436_v13  ;;  %v2592_v12 = vpack.c.bf16 %v1753_v0, %v1752_v59  ;;  %v1736_v13 = vld [vmem:[#allocation11 + $0x60] sm:$0xff] }
 0x5c3   : > { %v2594_v35 = vpack.c.bf16 %v1737_v14, %v1736_v13 }
 0x5c5   : > { %2567 = vmatpush1.bf16.msra.mxu0 %v2438_v34  ;;  %v1755_v34 = vld [vmem:[#allocation11 + $0xf8] sm:$0xff] }
 0x5c6   : > { %v2596_v40 = vpack.c.bf16 %v1755_v34, %v1754_v26 }
 0x65b   : > { %v1393_v2 = vpop.f32.mrb[4].mxu0 }
 0x65c   : > { %v1400_v9 = vrot.slane %v1393_v2, 6  ;;  %v1395_v18 = vpop.f32.mrb[5].mxu0 }
 0x65d   : > { %v1401_v20 = vrot.slane %v1395_v18, 6 }
 0x65e   : > { %v1404_v27 = vadd.f32 %v1400_v9, %v1261_v63 }
 0x65f   : > { %v1405_v28 = vadd.f32 %v1401_v20, %v1262_v10 }
 0x660   : > { %v1406_v37 = vmax.f32 %v1404_v27, 0.0 }
 0x661   : > { %v1407_v43 = vmax.f32 %v1405_v28, 0.0 }
 0x662   : > { %1408 = vst [vmem:[#allocation2 + $0x10] sm:$0xc] %v1406_v37  ;;  %v1478_v19 = vrot.slane %v1406_v37, 2  ;;  %v1977_v37 = vld [vmem:[#allocation12] ss:$0 sm:$0xff] }
 0x663   : > { %1409 = vst [vmem:[#allocation2 + $0x18] sm:$0xc] %v1407_v43  ;;  %v1479_v1 = vrot.slane %v1407_v43, 2 }
 0x665   : > { %1546 = vmatprep.mubr.f32.mxu1 %v1479_v1 }
 0x666   : > { %1547 = vmatmul.mubr.f32.vlgmr.msra.gmra.mrb[4].mxu1 %v1478_v19 }
 0x667   : > { %2571 = vmatpush3.bf16.msra.mxu1 %v2570_v6  ;;  %1827 = vmatprep.mubr.f32.mxu1 %v1721_v8  ;;  %v1566_v6 = vld [vmem:[#allocation2 + $0x18] sm:$0xc0] }
 0x668   : > { %2573 = vmatprep.subr.bf16.mxu1 %v2572_v24 }
 0x66b   : > { %2575 = vmatpush3.bf16.msra.mxu1 %v2574_v11 }
 0x66c   : > { %2577 = vmatprep.subr.bf16.mxu1 %v2576_v15 }
 0x66f   : > { %2579 = vmatpush3.bf16.msra.mxu1 %v2578_v23 }
 0x670   : > { %2581 = vmatprep.subr.bf16.mxu1 %v2580_v25 }
 0x673   : > { %2583 = vmatpush3.bf16.msra.mxu1 %v2582_v39 }
 0x674   : > { %2585 = vmatprep.subr.bf16.mxu1 %v2584_v54 }
 0x677   : > { %2587 = vmatpush3.bf16.msra.mxu1 %v2586_v48 }
 0x678   : > { %2589 = vmatprep.subr.bf16.mxu1 %v2588_v49 }
 0x67b   : > { %2591 = vmatpush3.bf16.msra.mxu1 %v2590_v7 }
 0x67c   : > { %2593 = vmatprep.subr.bf16.mxu1 %v2592_v12 }
 0x67f   : > { %2595 = vmatpush3.bf16.msra.mxu1 %v2594_v35 }
 0x680   : > { %2597 = vmatprep.subr.bf16.mxu1 %v2596_v40 }
 0x683   : > { %2599 = vmatpush3.bf16.msra.mxu1 %v2598_v60 }
 0x686   : > { %1828 = vmatmul.mubr.f32.vlgmr.msra.gmra.mrb[6].mxu1 %v1720_v61 }
 0x739   : > { %v1548_v5 = vpop.f32.mrb[4].mxu1 }
 0x73a   : > { %v1555_v41 = vrot.slane %v1548_v5, 4  ;;  %v1550_v56 = vpop.f32.mrb[5].mxu1 }
 0x73b   : > { %v1556_v63 = vrot.slane %v1550_v56, 4 }
 0x73c   : > { %v1559_v2 = vadd.f32 %v1555_v41, %v1410_v4 }
 0x73d   : > { %v1560_v9 = vadd.f32 %v1556_v63, %v1411_v53 }
 0x73e   : > { %v1561_v10 = vmax.f32 %v1559_v2, 0.0 }
 0x73f   : > { %v1562_v18 = vmax.f32 %v1560_v9, 0.0 }
 0x740   : > { %1563 = vst [vmem:[#allocation2 + $0x10] sm:$0x30] %v1561_v10  ;;  %v1633_v27 = vrot.slane %v1561_v10, 4 }
 0x741   : > { %1564 = vst [vmem:[#allocation2 + $0x18] sm:$0x30] %v1562_v18  ;;  %v1634_v20 = vrot.slane %v1562_v18, 4 }
 0x743   : > { %1701 = vmatprep.mubr.f32.mxu0 %v1634_v20 }
 0x744   : > { %1702 = vmatmul.mubr.f32.vlgmr.msra.gmra.mrb[6].mxu0 %v1633_v27 }
 0x759   : > { %v2018_v28 = vpop.f32.mrb[6].mxu1 }
 0x75a   : > { %v2019_v38 = vpop.f32.mrb[7].mxu1 }
 0x75b   : > { %v2020_v42 = vadd.f32 %v2019_v38, %v2018_v28 }
 0x75d   : > { %v1830_v43 = vadd.f32 %v2020_v42, %v1977_v37 }
 0x75f   : > { %1838 = vst [vmem:[#allocation14] sm:$0xff] %v1830_v43 }
 0x817   : > { %v1703_v51 = vpop.f32.mrb[6].mxu0 }
 0x818   : > { %v1710_v1 = vrot.slane %v1703_v51, 2  ;;  %v1705_v19 = vpop.f32.mrb[7].mxu0 }
 0x819   : > { %v1711_v24 = vrot.slane %v1705_v19, 2 }
 0x81a   : > { %v1714_v46 = vadd.f32 %v1710_v1, %v1565_v50 }
 0x81b   : > { %v1715_v47 = vadd.f32 %v1711_v24, %v1566_v6 }
 0x81c   : > { %v1716_v62 = vmax.f32 %v1714_v46, 0.0 }
 0x81d   : > { %v1717_v3 = vmax.f32 %v1715_v47, 0.0 }
 0x81e   : > { %1718 = vst [vmem:[#allocation2 + $0x10] sm:$0xc0] %v1716_v62 }
 0x81f   : > { %1719 = vst [vmem:[#allocation2 + $0x18] sm:$0xc0] %v1717_v3 }
 0x825   : > { %v1722_v11 = vld [vmem:[#allocation2 + $0x10] sm:$0xff] }
 0x826   : > { %v1723_v8 = vld [vmem:[#allocation2 + $0x18] sm:$0xff] }
 0x827   : > { %1832 = vmatprep.mubr.f32.mxu1 %v1723_v8 }
 0x828   : > { %1833 = vmatmul.mubr.f32.gmra.mrb[8].mxu1 %v1722_v11 }
 0x8fb   : > { %v2021_v15 = vpop.f32.mrb[8].mxu1 }
 0x8fc   : > { %v2022_v16 = vpop.f32.mrb[9].mxu1 }
 0x8fd   : > { %v2023_v17 = vadd.f32 %v2022_v16, %v2021_v15 }
 0x8ff   : > { %v1835_v21 = vadd.f32 %v2023_v17, %v1977_v37 }
 0x901   : > { %1839 = vst [vmem:[#allocation14 + $0x8] sm:$0xff] %v1835_v21 }
 0x902 PF: > { %p2661_p7 = scmp.eq.s32.totalorder %s3035_s25, 2  ;;  %s2978_s26 = smov [#allocation14]  }
 0x903   : > { %s1846_s27 = sshll.u32 %s2978_s26, 4  ;;  %s1847_s27 = int_to_ptr.vmem [resolvable:$true] %s1846_s27 }
 0x904   : > { %s2882_s30 = scalar_lea.vmem %s1847_s27, 256  ;;  %p2889_p2 = scmp.lt.s32.totalorder %s1847_s27, %s1847_s27 }
 0x905   : > { %p2883_p1 = scmp.ne.s32.totalorder %s1847_s27, %s2882_s30  ;;  %p2890_p4 = scmp.lt.s32.totalorder %s2882_s30, %s2882_s30 }
 0x907   : > { %p2884_p10 = pnand %p2883_p1, %p2661_p7  ;;  %p2891_p8 = por %p2890_p4, %p2889_p2 }
 0x909   : > { %p2885_p5 = pneg %p2884_p10 }
 0x90b   : > { %p2892_p6 = pnand %p2891_p8, %p2885_p5 }
 0x90d   : > { %2895 = shalt.err (!%p2892_p6)
}
 0x90e   : > { %s2896_s17 = scalar_lea.hbm %s3777_s6, 256 }
 0x90f   : > { %p2897_p12 = scmp.ne.s32.totalorder %s3777_s6, %s2896_s17  ;;  %p2902_p3 = scmp.lt.u32.totalorder %s2896_s17, %s3777_s6 }
 0x911   : > { %p2898_p13 = pnand %p2897_p12, %p2661_p7 }
 0x913   : > { %p2899_p0 = pneg %p2898_p13 }
 0x915   : > { %p2904_p9 = pnand %p2902_p3, %p2899_p0 }
 0x917   : > { %2907 = shalt.err (!%p2904_p9)
}
 0x918   : > { %s2979_s11 = smov 128   ;;  %s2980_s2 = smov 8  }
 0x919   : > { %2629 = dma.vmem_to_hbm [thread:$0]  (%p2661_p7), %s1847_s27, 256, %s3777_s6, [#allocation5], %s2979_s11, %s2979_s11, %s2980_s2  }
 0x91a   : > { %2945 = dma.done.wait (%p2661_p7), [#allocation5], 256  }
 0x91b   : > { %2947 = vsyncadd (%p2661_p7), [#allocation5], 4294967040 }
 0x91c PF: > { %p22_p11 = scmp.ge.s32.totalorder %s3159_s16, 5   ;;  %s3803_s21 = smov %s2954_s22 }
 0x91d   : > { %s3804_s22 = smov %s2958_s23  ;;  %s3805_s23 = smov %s3172_s7 }
 0x91e   : > { %s3806_s24 = smov %s3159_s16  ;;  %24 = sbr.rel (!%p22_p11) target bundleno = 11 (0xb), region = 118 }
 0x925   :  { %1862 = vsyncpa [#allocation4], 1 }
 0x926   :  { %1864 = vsyncpa [#allocation4 + $0x1], 1 }
 0x927   :  { %1865 = vsyncpa [#allocation7], 1 }
 0x928   :  { %1867 = vsyncpa [#allocation7 + $0x1], 1 }
 0x929   :  { %1868 = vsyncpa [#allocation10], 1 }
 0x92a   :  { %1869 = vsyncpa [#allocation13], 1 }
 0x92b   :  { %1870 = vsyncpa [#allocation5], 1 }
 0x92c   :  { %1872 = vsyncpa [#allocation5 + $0x1], 1 }

</bundles_post_ra>
